<compile_context>
chip_gen: v7x
topology: tpu7x:2x2x1
jax: 0.10.0
libtpu: 0.0.40
codegen_flags: <defaults>
</compile_context>

<pallas_src>
import functools

import jax
import jax.numpy as jnp
from jax.experimental import pallas as pl
from jax.experimental.pallas import tpu as pltpu


# ---------------------------------------------------------------------------
# Fused kernel: down-conv block + 3 dilated blocks + pool branch + 1x1 out conv
# ---------------------------------------------------------------------------
def _fused_kernel(cols_ref, wd_ref, bd_ref, wdil_ref, bdil_ref, wor_ref, wop_ref,
                  bo_ref, o_ref, x0pad_scr, taps_scr, acc_scr,
                  *, rates, Ho, Wo, maxpad):
    """Grid = (B, n_rates).  Per step (b, r):

    cols_ref: (16*Cin, HW)  im2col patches of the reflection-padded raw input
              (resident across r; only used at r==0).
    wd_ref:   (Cmid, 16*Cin)       bd_ref:  (Cmid, 1)
    wdil_ref: (Cmid, 9*Cmid)       bdil_ref:(Cmid, 1)   (rate r's slice)
    wor_ref:  (Cmid, Cmid)  1x1 out-conv slice for branch r
    wop_ref:  (Cmid, Cmid)  1x1 out-conv slice for the avg-pool branch
    bo_ref:   (Cmid, 1)            o_ref:   (Cmid, HW)  (accumulator across r)

    scratch:  x0pad_scr (Cmid, Lpad) flattened, zero-padded x0 for tap gather
              taps_scr  (9*Cmid, HW) one rate's tap slab
              acc_scr   (Cmid, HW)   f32 output accumulator
    """
    r = pl.program_id(1)
    C = acc_scr.shape[0]
    HW = Ho * Wo
    inv_hw = 1.0 / HW
    head = maxpad                       # flat head padding (keeps all slices in-bounds)
    off0 = head + maxpad * Wo           # flat offset of x0[:, 0, 0] inside the pad buffer
    n_rates = len(rates)

    # ---- r == 0: LeakyReLU -> 4x4/s2 conv (one matmul) -> InstanceNorm ------
    @pl.when(r == 0)
    def _stage1():
        cols = cols_ref[...]
        a = jnp.where(cols >= 0, cols, 0.2 * cols)                      # LeakyReLU(0.2)
        y = jnp.dot(wd_ref[...], a, preferred_element_type=jnp.float32) + bd_ref[...]
        s = jnp.sum(y, axis=-1, keepdims=True) * inv_hw                 # single-pass stats
        ss = jnp.sum(y * y, axis=-1, keepdims=True) * inv_hw
        x0 = (y - s) * jax.lax.rsqrt(ss - s * s + 1e-5)                 # InstanceNorm2d
        # Stash a zero-padded, flattened copy of x0 for in-kernel tap gathering.
        x0pad_scr[...] = jnp.zeros(x0pad_scr.shape, x0pad_scr.dtype)
        x0pad_scr[:, off0:off0 + HW] = x0.astype(x0pad_scr.dtype)
        # Init accumulator: residual + out-conv bias + avg-pool branch (per-channel const).
        pooled = jnp.sum(x0, axis=-1, keepdims=True) * inv_hw           # (Cmid, 1)
        acc_scr[...] = x0 + bo_ref[...] + jnp.dot(
            wop_ref[...], pooled, preferred_element_type=jnp.float32)

    # ---- every step: gather the 9 dilated taps for rate r into taps_scr -----
    # A spatial shift (di, dj) of the zero-padded image is, in the flattened
    # buffer, a contiguous slice starting at head + (maxpad+di)*Wo + dj; rows
    # that would wrap horizontally are zeroed with an iota column mask.
    wcoord = jax.lax.broadcasted_iota(jnp.int32, (1, HW), 1) % Wo
    for i in range(n_rates):
        @pl.when(r == i)
        def _gather(rate=rates[i]):
            for t in range(9):
                di = (t // 3 - 1) * rate
                dj = (t % 3 - 1) * rate
                base = head + (maxpad + di) * Wo + dj
                tap = x0pad_scr[:, base:base + HW]
                if dj != 0:
                    valid = jnp.logical_and(wcoord + dj >= 0, wcoord + dj < Wo)
                    tap = jnp.where(valid, tap, jnp.zeros_like(tap))
                taps_scr[t * C:(t + 1) * C, :] = tap

    # ---- one depth-9C matmul per rate + LeakyReLU + InstanceNorm + 1x1 out --
    y = jnp.dot(wdil_ref[...], taps_scr[...],
                preferred_element_type=jnp.float32) + bdil_ref[...]      # (Cmid, HW) f32
    y = jnp.where(y >= 0, y, 0.2 * y)                                    # LeakyReLU(0.2)
    s = jnp.sum(y, axis=-1, keepdims=True) * inv_hw
    ss = jnp.sum(y * y, axis=-1, keepdims=True) * inv_hw
    yn = (y - s) * jax.lax.rsqrt(ss - s * s + 1e-5)                      # InstanceNorm2d
    acc_scr[...] += jnp.dot(wor_ref[...], yn, preferred_element_type=jnp.float32)

    @pl.when(r == n_rates - 1)
    def _finalize():
        o_ref[...] = acc_scr[...].astype(o_ref.dtype)


# ---------------------------------------------------------------------------
# Wrapper-side spatial gather for stage 1 (pure data movement; no math)
# ---------------------------------------------------------------------------
def _im2col_4x4_s2(ap):
    """ap: (B, Cin, Hp, Wp) reflection-padded input -> (B, Cin*16, Ho*Wo)."""
    B, Cin, Hp, Wp = ap.shape
    Ho = (Hp - 4) // 2 + 1
    Wo = (Wp - 4) // 2 + 1
    taps = []
    for ki in range(4):
        for kj in range(4):
            taps.append(ap[:, :, ki:ki + 2 * (Ho - 1) + 1:2,
                              kj:kj + 2 * (Wo - 1) + 1:2])               # (B, Cin, Ho, Wo)
    cols = jnp.stack(taps, axis=2)                                       # (B, Cin, 16, Ho, Wo)
    return cols.reshape(B, Cin * 16, Ho * Wo)


# ---------------------------------------------------------------------------
# Forward
# ---------------------------------------------------------------------------
def multicontext_bridge4(x, wd, bd, wdil_list, bdil_list, wo, bo, rates=(3, 5, 7),
                         compute_dtype=jnp.float32):
    """x: (B, Cin, H, W) f32.  Weights use the PyTorch conv layout (OIHW).

    compute_dtype controls the MXU operand dtype of the two big contractions
    (stage-1 cols/weights and the dilated-conv taps/weights); accumulation,
    InstanceNorm statistics, biases, residual and stores stay float32.
    """
    B, Cin, H, W = x.shape
    Cmid = wd.shape[0]
    n_rates = len(rates)
    maxpad = max(rates)

    # Stage-1 gather: reflection pad + stride-2 patch extraction.
    # TODO(synk): pull this im2col in-kernel (strided pl.ds reads of the padded
    #             tile) for production sizes to kill the ~4x HBM duplication.
    ap = jnp.pad(x, ((0, 0), (0, 0), (1, 1), (1, 1)), mode="reflect")
    Ho = (H + 2 - 4) // 2 + 1
    Wo = (W + 2 - 4) // 2 + 1
    HW = Ho * Wo
    cols = _im2col_4x4_s2(ap).astype(compute_dtype)                      # (B, 16*Cin, HW)
    K = Cin * 16

    wd_flat = wd.reshape(Cmid, K).astype(compute_dtype)
    bd_col = bd.reshape(Cmid, 1).astype(jnp.float32)
    # Dilated weights -> (n_rates, Cout, 9*Cin), column order (tap, cin) matching
    # the in-kernel tap stacking (one matmul per rate, contraction depth 9*C).
    wdil_all = jnp.stack([w.transpose(0, 2, 3, 1).reshape(Cmid, 9 * Cmid)
                          for w in wdil_list]).astype(compute_dtype)
    bdil_all = jnp.stack(bdil_list).reshape(n_rates, Cmid, 1).astype(jnp.float32)
    # 1x1 output conv split per input branch (3 dilated branches + pool branch).
    wo_stack = wo.reshape(Cmid, n_rates + 1, Cmid).transpose(1, 0, 2).astype(jnp.float32)
    wor_all = wo_stack[:n_rates]                                         # (n_rates, Cmid, Cmid)
    wop = wo_stack[n_rates]                                              # (Cmid, Cmid)
    bo_col = bo.reshape(Cmid, 1).astype(jnp.float32)

    # Flattened, zero-padded x0 buffer: maxpad rows of vertical zero padding on
    # each side plus maxpad flat head/tail so every shifted slice is in-bounds.
    Lpad = 2 * maxpad + (Ho + 2 * maxpad) * Wo

    kernel = functools.partial(_fused_kernel, rates=tuple(rates), Ho=Ho, Wo=Wo,
                               maxpad=maxpad)

    out = pl.pallas_call(
        kernel,
        out_shape=jax.ShapeDtypeStruct((B, Cmid, HW), jnp.float32),
        grid_spec=pltpu.PrefetchScalarGridSpec(
            num_scalar_prefetch=0,
            grid=(B, n_rates),
            in_specs=[
                pl.BlockSpec((None, K, HW), lambda b, r: (b, 0, 0)),        # cols (per b)
                pl.BlockSpec((Cmid, K), lambda b, r: (0, 0)),               # wd
                pl.BlockSpec((Cmid, 1), lambda b, r: (0, 0)),               # bd
                pl.BlockSpec((None, Cmid, 9 * Cmid), lambda b, r: (r, 0, 0)),  # wdil (per r)
                pl.BlockSpec((None, Cmid, 1), lambda b, r: (r, 0, 0)),      # bdil (per r)
                pl.BlockSpec((None, Cmid, Cmid), lambda b, r: (r, 0, 0)),   # wout branch r
                pl.BlockSpec((Cmid, Cmid), lambda b, r: (0, 0)),            # wout pool
                pl.BlockSpec((Cmid, 1), lambda b, r: (0, 0)),               # bout
            ],
            out_specs=pl.BlockSpec((None, Cmid, HW), lambda b, r: (b, 0, 0)),
            scratch_shapes=[
                pltpu.VMEM((Cmid, Lpad), compute_dtype),     # zero-padded flat x0
                pltpu.VMEM((9 * Cmid, HW), compute_dtype),   # one rate's tap slab
                pltpu.VMEM((Cmid, HW), jnp.float32),         # f32 output accumulator
            ],
        ),
        compiler_params=pltpu.CompilerParams(
            dimension_semantics=("parallel", "arbitrary"),
            vmem_limit_bytes=32 * 1024 * 1024,               # explicit VMEM budget
        ),
    )(cols, wd_flat, bd_col, wdil_all, bdil_all, wor_all, wop, bo_col)

    return out.reshape(B, Cmid, Ho, Wo)


# ---------------------------------------------------------------------------
# Pure-JAX reference mirroring the PyTorch forward
# ---------------------------------------------------------------------------
def multicontext_bridge4_ref(x, wd, bd, wdil_list, bdil_list, wo, bo, rates=(3, 5, 7)):
    def leaky(v):
        return jnp.where(v >= 0, v, 0.2 * v)

    def inorm(v, eps=1e-5):
        mu = jnp.mean(v, axis=(2, 3), keepdims=True)
        var = jnp.mean((v - mu) ** 2, axis=(2, 3), keepdims=True)
        return (v - mu) * jax.lax.rsqrt(var + eps)

    dn = ("NCHW", "OIHW", "NCHW")
    a = jnp.pad(leaky(x), ((0, 0), (0, 0), (1, 1), (1, 1)), mode="reflect")
    x0 = jax.lax.conv_general_dilated(a, wd, (2, 2), "VALID", dimension_numbers=dn)
    x0 = inorm(x0 + bd[None, :, None, None])

    branches = []
    for r, w, b in zip(rates, wdil_list, bdil_list):
        y = jax.lax.conv_general_dilated(x0, w, (1, 1), [(r, r), (r, r)],
                                         rhs_dilation=(r, r), dimension_numbers=dn)
        branches.append(inorm(leaky(y + b[None, :, None, None])))

    x4 = jnp.mean(x0, axis=(2, 3), keepdims=True) * jnp.ones_like(branches[0])
    cat = jnp.concatenate(branches + [x4], axis=1)
    out = jax.lax.conv_general_dilated(cat, wo, (1, 1), "VALID", dimension_numbers=dn)
    return out + bo[None, :, None, None] + x0


if __name__ == "__main__":
    B, Cin, H, W = 2, 4, 16, 16
    Cmid = 8
    rates = (3, 5, 7)

    key = jax.random.PRNGKey(0)
    ks = jax.random.split(key, 12)

    x = jax.random.normal(ks[0], (B, Cin, H, W), dtype=jnp.float32)
    wd = jax.random.normal(ks[1], (Cmid, Cin, 4, 4), jnp.float32) / jnp.sqrt(Cin * 16.0)
    bd = jax.random.normal(ks[2], (Cmid,), jnp.float32) * 0.01
    wdil_list = [jax.random.normal(ks[3 + i], (Cmid, Cmid, 3, 3), jnp.float32)
                 / jnp.sqrt(Cmid * 9.0) for i in range(3)]
    bdil_list = [jax.random.normal(ks[6 + i], (Cmid,), jnp.float32) * 0.01 for i in range(3)]
    wo = jax.random.normal(ks[9], (Cmid, 4 * Cmid, 1, 1), jnp.float32) / jnp.sqrt(4.0 * Cmid)
    bo = jax.random.normal(ks[10], (Cmid,), jnp.float32) * 0.01

    ref = multicontext_bridge4_ref(x, wd, bd, wdil_list, bdil_list, wo, bo, rates)

    # f32 data path: strict check against the pure-JAX reference.
    out = multicontext_bridge4(x, wd, bd, wdil_list, bdil_list, wo, bo, rates,
                               compute_dtype=jnp.float32)
    out = jax.block_until_ready(out)
    assert out.shape == (B, Cmid, H // 2, W // 2)
    assert jnp.allclose(out, ref, atol=1e-4, rtol=1e-4)

    # bf16 MXU-operand path (feedback: bf16 matmuls, f32 stats/residual).
    # Loose tolerance: bf16 has 8 mantissa bits, stats/accumulation stay f32.
    out_bf16 = multicontext_bridge4(x, wd, bd, wdil_list, bdil_list, wo, bo, rates,
                                    compute_dtype=jnp.bfloat16)
    out_bf16 = jax.block_until_ready(out_bf16)
    assert bool(jnp.all(jnp.isfinite(out_bf16)))
    assert float(jnp.max(jnp.abs(out_bf16 - ref))) < 0.25

    print("KERNEL_OK")
</pallas_src>

<mosaic_0001>
module attributes {stable_mosaic.version = 11 : i64} {
  func.func @_fused_kernel(%arg0: i32, %arg1: i32, %arg2: memref<1x64x64xf32, #tpu.memory_space<vmem>>, %arg3: memref<8x64xf32, #tpu.memory_space<vmem>>, %arg4: memref<8x1xf32, #tpu.memory_space<vmem>>, %arg5: memref<1x8x72xf32, #tpu.memory_space<vmem>>, %arg6: memref<1x8x1xf32, #tpu.memory_space<vmem>>, %arg7: memref<1x8x8xf32, #tpu.memory_space<vmem>>, %arg8: memref<8x8xf32, #tpu.memory_space<vmem>>, %arg9: memref<8x1xf32, #tpu.memory_space<vmem>>, %arg10: memref<1x8x64xf32, #tpu.memory_space<vmem>>, %arg11: memref<8x190xf32, #tpu.memory_space<vmem>>, %arg12: memref<72x64xf32, #tpu.memory_space<vmem>>, %arg13: memref<8x64xf32, #tpu.memory_space<vmem>>) attributes {dimension_semantics = [#tpu.dimension_semantics<parallel>, #tpu.dimension_semantics<arbitrary>], iteration_bounds = array<i64: 2, 3>, scalar_prefetch = 0 : i64, scratch_operands = 3 : i64, tpu.core_type = #tpu.core_type<tc>, window_params = [{transform_indices = @transform_0, window_bounds = array<i64: 1, 64, 64>}, {pipeline_mode = #tpu.pipeline_mode<synchronous>, transform_indices = @transform_1, window_bounds = array<i64: 8, 64>}, {pipeline_mode = #tpu.pipeline_mode<synchronous>, transform_indices = @transform_2, window_bounds = array<i64: 8, 1>}, {transform_indices = @transform_3, window_bounds = array<i64: 1, 8, 72>}, {transform_indices = @transform_4, window_bounds = array<i64: 1, 8, 1>}, {transform_indices = @transform_5, window_bounds = array<i64: 1, 8, 8>}, {pipeline_mode = #tpu.pipeline_mode<synchronous>, transform_indices = @transform_6, window_bounds = array<i64: 8, 8>}, {pipeline_mode = #tpu.pipeline_mode<synchronous>, transform_indices = @transform_7, window_bounds = array<i64: 8, 1>}, {transform_indices = @transform_8, window_bounds = array<i64: 1, 8, 64>}]} {
    %c0_i32 = arith.constant 0 : i32
    %0 = arith.cmpi eq, %arg1, %c0_i32 : i32
    %1 = arith.extui %0 : i1 to i32
    %c0_i32_0 = arith.constant 0 : i32
    %2 = arith.cmpi ne, %1, %c0_i32_0 : i32
    scf.if %2 {
      %c0_34 = arith.constant 0 : index
      %c0_35 = arith.constant 0 : index
      %c0_36 = arith.constant 0 : index
      %69 = vector.load %arg2[%c0_34, %c0_35, %c0_36] : memref<1x64x64xf32, #tpu.memory_space<vmem>>, vector<1x64x64xf32>
      %70 = vector.shape_cast %69 : vector<1x64x64xf32> to vector<64x64xf32>
      %cst_37 = arith.constant 0.000000e+00 : f32
      %71 = vector.broadcast %cst_37 : f32 to vector<64x64xf32>
      %72 = arith.cmpf oge, %70, %71 : vector<64x64xf32>
      %cst_38 = arith.constant 2.000000e-01 : f32
      %73 = vector.broadcast %cst_38 : f32 to vector<64x64xf32>
      %74 = arith.mulf %73, %70 : vector<64x64xf32>
      %75 = arith.select %72, %70, %74 : vector<64x64xi1>, vector<64x64xf32>
      %c0_39 = arith.constant 0 : index
      %c0_40 = arith.constant 0 : index
      %76 = vector.load %arg3[%c0_39, %c0_40] : memref<8x64xf32, #tpu.memory_space<vmem>>, vector<8x64xf32>
      %cst_41 = arith.constant dense<0.000000e+00> : vector<8x64xf32>
      %77 = tpu.matmul %76, %75, %cst_41 {dimension_numbers = #tpu.dot_dimension_numbers<[1], [0], [0], [1], [0, 0, 1, 1], [], []>} : vector<8x64xf32>, vector<64x64xf32>, vector<8x64xf32> -> vector<8x64xf32>
      %c0_42 = arith.constant 0 : index
      %c0_43 = arith.constant 0 : index
      %78 = vector.load %arg4[%c0_42, %c0_43] : memref<8x1xf32, #tpu.memory_space<vmem>>, vector<8x1xf32>
      %79 = vector.broadcast %78 : vector<8x1xf32> to vector<8x64xf32>
      %80 = arith.addf %77, %79 : vector<8x64xf32>
      %cst_44 = arith.constant dense<0.000000e+00> : vector<8xf32>
      %81 = vector.multi_reduction <add>, %80, %cst_44 [1] : vector<8x64xf32> to vector<8xf32>
      %82 = vector.shape_cast %81 : vector<8xf32> to vector<8x1xf32>
      %cst_45 = arith.constant 1.562500e-02 : f32
      %83 = vector.broadcast %cst_45 : f32 to vector<8x1xf32>
      %84 = arith.mulf %82, %83 : vector<8x1xf32>
      %85 = arith.mulf %80, %80 : vector<8x64xf32>
      %cst_46 = arith.constant dense<0.000000e+00> : vector<8xf32>
      %86 = vector.multi_reduction <add>, %85, %cst_46 [1] : vector<8x64xf32> to vector<8xf32>
      %87 = vector.shape_cast %86 : vector<8xf32> to vector<8x1xf32>
      %cst_47 = arith.constant 1.562500e-02 : f32
      %88 = vector.broadcast %cst_47 : f32 to vector<8x1xf32>
      %89 = arith.mulf %87, %88 : vector<8x1xf32>
      %90 = vector.broadcast %84 : vector<8x1xf32> to vector<8x64xf32>
      %91 = arith.subf %80, %90 : vector<8x64xf32>
      %92 = arith.mulf %84, %84 : vector<8x1xf32>
      %93 = arith.subf %89, %92 : vector<8x1xf32>
      %cst_48 = arith.constant 9.99999974E-6 : f32
      %94 = vector.broadcast %cst_48 : f32 to vector<8x1xf32>
      %95 = arith.addf %93, %94 : vector<8x1xf32>
      %96 = math.rsqrt %95 : vector<8x1xf32>
      %97 = vector.broadcast %96 : vector<8x1xf32> to vector<8x64xf32>
      %98 = arith.mulf %91, %97 : vector<8x64xf32>
      %cst_49 = arith.constant 0.000000e+00 : f32
      %99 = vector.broadcast %cst_49 : f32 to vector<8x190xf32>
      %c0_50 = arith.constant 0 : index
      %c0_51 = arith.constant 0 : index
      %100 = vector.load %arg11[%c0_50, %c0_51] : memref<8x190xf32, #tpu.memory_space<vmem>>, vector<8x190xf32>
      tpu.vector_store %arg11[%c0_50, %c0_51], %99 {strides = array<i32>} : memref<8x190xf32, #tpu.memory_space<vmem>>, vector<8x190xf32>,
      %c0_52 = arith.constant 0 : index
      %c63 = arith.constant 63 : index
      %101 = vector.load %arg11[%c0_52, %c63] : memref<8x190xf32, #tpu.memory_space<vmem>>, vector<8x64xf32>
      tpu.vector_store %arg11[%c0_52, %c63], %98 {strides = array<i32>} : memref<8x190xf32, #tpu.memory_space<vmem>>, vector<8x64xf32>,
      %cst_53 = arith.constant dense<0.000000e+00> : vector<8xf32>
      %102 = vector.multi_reduction <add>, %98, %cst_53 [1] : vector<8x64xf32> to vector<8xf32>
      %103 = vector.shape_cast %102 : vector<8xf32> to vector<8x1xf32>
      %cst_54 = arith.constant 1.562500e-02 : f32
      %104 = vector.broadcast %cst_54 : f32 to vector<8x1xf32>
      %105 = arith.mulf %103, %104 : vector<8x1xf32>
      %c0_55 = arith.constant 0 : index
      %c0_56 = arith.constant 0 : index
      %106 = vector.load %arg9[%c0_55, %c0_56] : memref<8x1xf32, #tpu.memory_space<vmem>>, vector<8x1xf32>
      %107 = vector.broadcast %106 : vector<8x1xf32> to vector<8x64xf32>
      %108 = arith.addf %98, %107 : vector<8x64xf32>
      %c0_57 = arith.constant 0 : index
      %c0_58 = arith.constant 0 : index
      %109 = vector.load %arg8[%c0_57, %c0_58] : memref<8x8xf32, #tpu.memory_space<vmem>>, vector<8x8xf32>
      %cst_59 = arith.constant dense<0.000000e+00> : vector<8x1xf32>
      %110 = tpu.matmul %109, %105, %cst_59 {dimension_numbers = #tpu.dot_dimension_numbers<[1], [0], [0], [1], [0, 0, 1, 1], [], []>} : vector<8x8xf32>, vector<8x1xf32>, vector<8x1xf32> -> vector<8x1xf32>
      %111 = vector.broadcast %110 : vector<8x1xf32> to vector<8x64xf32>
      %112 = arith.addf %108, %111 : vector<8x64xf32>
      %c0_60 = arith.constant 0 : index
      %c0_61 = arith.constant 0 : index
      %113 = vector.load %arg13[%c0_60, %c0_61] : memref<8x64xf32, #tpu.memory_space<vmem>>, vector<8x64xf32>
      tpu.vector_store %arg13[%c0_60, %c0_61], %112 {strides = array<i32>} : memref<8x64xf32, #tpu.memory_space<vmem>>, vector<8x64xf32>,
    } else {
    }
    %3 = tpu.iota {dimensions = array<i32: 1>} : vector<1x64xi32>
    %c8_i32 = arith.constant 8 : i32
    %c0_i32_1 = arith.constant 0 : i32
    %4 = arith.cmpi eq, %c8_i32, %c0_i32_1 : i32
    %c1_i32 = arith.constant 1 : i32
    %5 = arith.select %4, %c1_i32, %c8_i32 : i32
    %6 = vector.broadcast %5 : i32 to vector<1x64xi32>
    %7 = arith.remsi %3, %6 : vector<1x64xi32>
    %c0_i32_2 = arith.constant 0 : i32
    %8 = vector.broadcast %c0_i32_2 : i32 to vector<1x64xi32>
    %9 = arith.cmpi ne, %7, %8 : vector<1x64xi32>
    %c0_i32_3 = arith.constant 0 : i32
    %10 = vector.broadcast %c0_i32_3 : i32 to vector<1x64xi32>
    %11 = arith.cmpi slt, %7, %10 : vector<1x64xi32>
    %c0_i32_4 = arith.constant 0 : i32
    %12 = arith.cmpi slt, %5, %c0_i32_4 : i32
    %13 = vector.broadcast %12 : i1 to vector<1x64xi1>
    %14 = vector.broadcast %13 : vector<1x64xi1> to vector<1x64xi1>
    %15 = arith.xori %11, %14 : vector<1x64xi1>
    %16 = arith.andi %15, %9 : vector<1x64xi1>
    %17 = vector.broadcast %5 : i32 to vector<1x64xi32>
    %18 = arith.addi %7, %17 : vector<1x64xi32>
    %19 = arith.select %16, %18, %7 : vector<1x64xi1>, vector<1x64xi32>
    %c0_i32_5 = arith.constant 0 : i32
    %20 = arith.cmpi eq, %arg1, %c0_i32_5 : i32
    %21 = arith.extui %20 : i1 to i32
    %c0_i32_6 = arith.constant 0 : i32
    %22 = arith.cmpi ne, %21, %c0_i32_6 : i32
    scf.if %22 {
      %c0_34 = arith.constant 0 : index
      %c36 = arith.constant 36 : index
      %69 = vector.load %arg11[%c0_34, %c36] : memref<8x190xf32, #tpu.memory_space<vmem>>, vector<8x64xf32>
      %c-3_i32 = arith.constant -3 : i32
      %70 = vector.broadcast %c-3_i32 : i32 to vector<1x64xi32>
      %71 = arith.addi %19, %70 : vector<1x64xi32>
      %c0_i32_35 = arith.constant 0 : i32
      %72 = vector.broadcast %c0_i32_35 : i32 to vector<1x64xi32>
      %73 = arith.cmpi sge, %71, %72 : vector<1x64xi32>
      %c-3_i32_36 = arith.constant -3 : i32
      %74 = vector.broadcast %c-3_i32_36 : i32 to vector<1x64xi32>
      %75 = arith.addi %19, %74 : vector<1x64xi32>
      %c8_i32_37 = arith.constant 8 : i32
      %76 = vector.broadcast %c8_i32_37 : i32 to vector<1x64xi32>
      %77 = arith.cmpi slt, %75, %76 : vector<1x64xi32>
      %78 = arith.andi %73, %77 : vector<1x64xi1>
      %cst_38 = arith.constant 0.000000e+00 : f32
      %79 = vector.broadcast %cst_38 : f32 to vector<8x64xf32>
      %80 = vector.shape_cast %78 : vector<1x64xi1> to vector<1x64xi1>
      %81 = vector.broadcast %80 : vector<1x64xi1> to vector<8x64xi1>
      %82 = arith.select %81, %69, %79 : vector<8x64xi1>, vector<8x64xf32>
      %c0_39 = arith.constant 0 : index
      %c0_40 = arith.constant 0 : index
      %83 = vector.load %arg12[%c0_39, %c0_40] : memref<72x64xf32, #tpu.memory_space<vmem>>, vector<8x64xf32>
      tpu.vector_store %arg12[%c0_39, %c0_40], %82 {strides = array<i32>} : memref<72x64xf32, #tpu.memory_space<vmem>>, vector<8x64xf32>,
      %c0_41 = arith.constant 0 : index
      %c39 = arith.constant 39 : index
      %84 = vector.load %arg11[%c0_41, %c39] : memref<8x190xf32, #tpu.memory_space<vmem>>, vector<8x64xf32>
      %c8 = arith.constant 8 : index
      %c0_42 = arith.constant 0 : index
      %85 = vector.load %arg12[%c8, %c0_42] : memref<72x64xf32, #tpu.memory_space<vmem>>, vector<8x64xf32>
      tpu.vector_store %arg12[%c8, %c0_42], %84 {strides = array<i32>} : memref<72x64xf32, #tpu.memory_space<vmem>>, vector<8x64xf32>,
      %c0_43 = arith.constant 0 : index
      %c42 = arith.constant 42 : index
      %86 = vector.load %arg11[%c0_43, %c42] : memref<8x190xf32, #tpu.memory_space<vmem>>, vector<8x64xf32>
      %c3_i32 = arith.constant 3 : i32
      %87 = vector.broadcast %c3_i32 : i32 to vector<1x64xi32>
      %88 = arith.addi %19, %87 : vector<1x64xi32>
      %c0_i32_44 = arith.constant 0 : i32
      %89 = vector.broadcast %c0_i32_44 : i32 to vector<1x64xi32>
      %90 = arith.cmpi sge, %88, %89 : vector<1x64xi32>
      %c3_i32_45 = arith.constant 3 : i32
      %91 = vector.broadcast %c3_i32_45 : i32 to vector<1x64xi32>
      %92 = arith.addi %19, %91 : vector<1x64xi32>
      %c8_i32_46 = arith.constant 8 : i32
      %93 = vector.broadcast %c8_i32_46 : i32 to vector<1x64xi32>
      %94 = arith.cmpi slt, %92, %93 : vector<1x64xi32>
      %95 = arith.andi %90, %94 : vector<1x64xi1>
      %cst_47 = arith.constant 0.000000e+00 : f32
      %96 = vector.broadcast %cst_47 : f32 to vector<8x64xf32>
      %97 = vector.shape_cast %95 : vector<1x64xi1> to vector<1x64xi1>
      %98 = vector.broadcast %97 : vector<1x64xi1> to vector<8x64xi1>
      %99 = arith.select %98, %86, %96 : vector<8x64xi1>, vector<8x64xf32>
      %c16 = arith.constant 16 : index
      %c0_48 = arith.constant 0 : index
      %100 = vector.load %arg12[%c16, %c0_48] : memref<72x64xf32, #tpu.memory_space<vmem>>, vector<8x64xf32>
      tpu.vector_store %arg12[%c16, %c0_48], %99 {strides = array<i32>} : memref<72x64xf32, #tpu.memory_space<vmem>>, vector<8x64xf32>,
      %c0_49 = arith.constant 0 : index
      %c60 = arith.constant 60 : index
      %101 = vector.load %arg11[%c0_49, %c60] : memref<8x190xf32, #tpu.memory_space<vmem>>, vector<8x64xf32>
      %c-3_i32_50 = arith.constant -3 : i32
      %102 = vector.broadcast %c-3_i32_50 : i32 to vector<1x64xi32>
      %103 = arith.addi %19, %102 : vector<1x64xi32>
      %c0_i32_51 = arith.constant 0 : i32
      %104 = vector.broadcast %c0_i32_51 : i32 to vector<1x64xi32>
      %105 = arith.cmpi sge, %103, %104 : vector<1x64xi32>
      %c-3_i32_52 = arith.constant -3 : i32
      %106 = vector.broadcast %c-3_i32_52 : i32 to vector<1x64xi32>
      %107 = arith.addi %19, %106 : vector<1x64xi32>
      %c8_i32_53 = arith.constant 8 : i32
      %108 = vector.broadcast %c8_i32_53 : i32 to vector<1x64xi32>
      %109 = arith.cmpi slt, %107, %108 : vector<1x64xi32>
      %110 = arith.andi %105, %109 : vector<1x64xi1>
      %cst_54 = arith.constant 0.000000e+00 : f32
      %111 = vector.broadcast %cst_54 : f32 to vector<8x64xf32>
      %112 = vector.shape_cast %110 : vector<1x64xi1> to vector<1x64xi1>
      %113 = vector.broadcast %112 : vector<1x64xi1> to vector<8x64xi1>
      %114 = arith.select %113, %101, %111 : vector<8x64xi1>, vector<8x64xf32>
      %c24 = arith.constant 24 : index
      %c0_55 = arith.constant 0 : index
      %115 = vector.load %arg12[%c24, %c0_55] : memref<72x64xf32, #tpu.memory_space<vmem>>, vector<8x64xf32>
      tpu.vector_store %arg12[%c24, %c0_55], %114 {strides = array<i32>} : memref<72x64xf32, #tpu.memory_space<vmem>>, vector<8x64xf32>,
      %c0_56 = arith.constant 0 : index
      %c63 = arith.constant 63 : index
      %116 = vector.load %arg11[%c0_56, %c63] : memref<8x190xf32, #tpu.memory_space<vmem>>, vector<8x64xf32>
      %c32 = arith.constant 32 : index
      %c0_57 = arith.constant 0 : index
      %117 = vector.load %arg12[%c32, %c0_57] : memref<72x64xf32, #tpu.memory_space<vmem>>, vector<8x64xf32>
      tpu.vector_store %arg12[%c32, %c0_57], %116 {strides = array<i32>} : memref<72x64xf32, #tpu.memory_space<vmem>>, vector<8x64xf32>,
      %c0_58 = arith.constant 0 : index
      %c66 = arith.constant 66 : index
      %118 = vector.load %arg11[%c0_58, %c66] : memref<8x190xf32, #tpu.memory_space<vmem>>, vector<8x64xf32>
      %c3_i32_59 = arith.constant 3 : i32
      %119 = vector.broadcast %c3_i32_59 : i32 to vector<1x64xi32>
      %120 = arith.addi %19, %119 : vector<1x64xi32>
      %c0_i32_60 = arith.constant 0 : i32
      %121 = vector.broadcast %c0_i32_60 : i32 to vector<1x64xi32>
      %122 = arith.cmpi sge, %120, %121 : vector<1x64xi32>
      %c3_i32_61 = arith.constant 3 : i32
      %123 = vector.broadcast %c3_i32_61 : i32 to vector<1x64xi32>
      %124 = arith.addi %19, %123 : vector<1x64xi32>
      %c8_i32_62 = arith.constant 8 : i32
      %125 = vector.broadcast %c8_i32_62 : i32 to vector<1x64xi32>
      %126 = arith.cmpi slt, %124, %125 : vector<1x64xi32>
      %127 = arith.andi %122, %126 : vector<1x64xi1>
      %cst_63 = arith.constant 0.000000e+00 : f32
      %128 = vector.broadcast %cst_63 : f32 to vector<8x64xf32>
      %129 = vector.shape_cast %127 : vector<1x64xi1> to vector<1x64xi1>
      %130 = vector.broadcast %129 : vector<1x64xi1> to vector<8x64xi1>
      %131 = arith.select %130, %118, %128 : vector<8x64xi1>, vector<8x64xf32>
      %c40 = arith.constant 40 : index
      %c0_64 = arith.constant 0 : index
      %132 = vector.load %arg12[%c40, %c0_64] : memref<72x64xf32, #tpu.memory_space<vmem>>, vector<8x64xf32>
      tpu.vector_store %arg12[%c40, %c0_64], %131 {strides = array<i32>} : memref<72x64xf32, #tpu.memory_space<vmem>>, vector<8x64xf32>,
      %c0_65 = arith.constant 0 : index
      %c84 = arith.constant 84 : index
      %133 = vector.load %arg11[%c0_65, %c84] : memref<8x190xf32, #tpu.memory_space<vmem>>, vector<8x64xf32>
      %c-3_i32_66 = arith.constant -3 : i32
      %134 = vector.broadcast %c-3_i32_66 : i32 to vector<1x64xi32>
      %135 = arith.addi %19, %134 : vector<1x64xi32>
      %c0_i32_67 = arith.constant 0 : i32
      %136 = vector.broadcast %c0_i32_67 : i32 to vector<1x64xi32>
      %137 = arith.cmpi sge, %135, %136 : vector<1x64xi32>
      %c-3_i32_68 = arith.constant -3 : i32
      %138 = vector.broadcast %c-3_i32_68 : i32 to vector<1x64xi32>
      %139 = arith.addi %19, %138 : vector<1x64xi32>
      %c8_i32_69 = arith.constant 8 : i32
      %140 = vector.broadcast %c8_i32_69 : i32 to vector<1x64xi32>
      %141 = arith.cmpi slt, %139, %140 : vector<1x64xi32>
      %142 = arith.andi %137, %141 : vector<1x64xi1>
      %cst_70 = arith.constant 0.000000e+00 : f32
      %143 = vector.broadcast %cst_70 : f32 to vector<8x64xf32>
      %144 = vector.shape_cast %142 : vector<1x64xi1> to vector<1x64xi1>
      %145 = vector.broadcast %144 : vector<1x64xi1> to vector<8x64xi1>
      %146 = arith.select %145, %133, %143 : vector<8x64xi1>, vector<8x64xf32>
      %c48 = arith.constant 48 : index
      %c0_71 = arith.constant 0 : index
      %147 = vector.load %arg12[%c48, %c0_71] : memref<72x64xf32, #tpu.memory_space<vmem>>, vector<8x64xf32>
      tpu.vector_store %arg12[%c48, %c0_71], %146 {strides = array<i32>} : memref<72x64xf32, #tpu.memory_space<vmem>>, vector<8x64xf32>,
      %c0_72 = arith.constant 0 : index
      %c87 = arith.constant 87 : index
      %148 = vector.load %arg11[%c0_72, %c87] : memref<8x190xf32, #tpu.memory_space<vmem>>, vector<8x64xf32>
      %c56 = arith.constant 56 : index
      %c0_73 = arith.constant 0 : index
      %149 = vector.load %arg12[%c56, %c0_73] : memref<72x64xf32, #tpu.memory_space<vmem>>, vector<8x64xf32>
      tpu.vector_store %arg12[%c56, %c0_73], %148 {strides = array<i32>} : memref<72x64xf32, #tpu.memory_space<vmem>>, vector<8x64xf32>,
      %c0_74 = arith.constant 0 : index
      %c90 = arith.constant 90 : index
      %150 = vector.load %arg11[%c0_74, %c90] : memref<8x190xf32, #tpu.memory_space<vmem>>, vector<8x64xf32>
      %c3_i32_75 = arith.constant 3 : i32
      %151 = vector.broadcast %c3_i32_75 : i32 to vector<1x64xi32>
      %152 = arith.addi %19, %151 : vector<1x64xi32>
      %c0_i32_76 = arith.constant 0 : i32
      %153 = vector.broadcast %c0_i32_76 : i32 to vector<1x64xi32>
      %154 = arith.cmpi sge, %152, %153 : vector<1x64xi32>
      %c3_i32_77 = arith.constant 3 : i32
      %155 = vector.broadcast %c3_i32_77 : i32 to vector<1x64xi32>
      %156 = arith.addi %19, %155 : vector<1x64xi32>
      %c8_i32_78 = arith.constant 8 : i32
      %157 = vector.broadcast %c8_i32_78 : i32 to vector<1x64xi32>
      %158 = arith.cmpi slt, %156, %157 : vector<1x64xi32>
      %159 = arith.andi %154, %158 : vector<1x64xi1>
      %cst_79 = arith.constant 0.000000e+00 : f32
      %160 = vector.broadcast %cst_79 : f32 to vector<8x64xf32>
      %161 = vector.shape_cast %159 : vector<1x64xi1> to vector<1x64xi1>
      %162 = vector.broadcast %161 : vector<1x64xi1> to vector<8x64xi1>
      %163 = arith.select %162, %150, %160 : vector<8x64xi1>, vector<8x64xf32>
      %c64 = arith.constant 64 : index
      %c0_80 = arith.constant 0 : index
      %164 = vector.load %arg12[%c64, %c0_80] : memref<72x64xf32, #tpu.memory_space<vmem>>, vector<8x64xf32>
      tpu.vector_store %arg12[%c64, %c0_80], %163 {strides = array<i32>} : memref<72x64xf32, #tpu.memory_space<vmem>>, vector<8x64xf32>,
    } else {
    }
    %c1_i32_7 = arith.constant 1 : i32
    %23 = arith.cmpi eq, %arg1, %c1_i32_7 : i32
    %24 = arith.extui %23 : i1 to i32
    %c0_i32_8 = arith.constant 0 : i32
    %25 = arith.cmpi ne, %24, %c0_i32_8 : i32
    scf.if %25 {
      %c0_34 = arith.constant 0 : index
      %c18 = arith.constant 18 : index
      %69 = vector.load %arg11[%c0_34, %c18] : memref<8x190xf32, #tpu.memory_space<vmem>>, vector<8x64xf32>
      %c-5_i32 = arith.constant -5 : i32
      %70 = vector.broadcast %c-5_i32 : i32 to vector<1x64xi32>
      %71 = arith.addi %19, %70 : vector<1x64xi32>
      %c0_i32_35 = arith.constant 0 : i32
      %72 = vector.broadcast %c0_i32_35 : i32 to vector<1x64xi32>
      %73 = arith.cmpi sge, %71, %72 : vector<1x64xi32>
      %c-5_i32_36 = arith.constant -5 : i32
      %74 = vector.broadcast %c-5_i32_36 : i32 to vector<1x64xi32>
      %75 = arith.addi %19, %74 : vector<1x64xi32>
      %c8_i32_37 = arith.constant 8 : i32
      %76 = vector.broadcast %c8_i32_37 : i32 to vector<1x64xi32>
      %77 = arith.cmpi slt, %75, %76 : vector<1x64xi32>
      %78 = arith.andi %73, %77 : vector<1x64xi1>
      %cst_38 = arith.constant 0.000000e+00 : f32
      %79 = vector.broadcast %cst_38 : f32 to vector<8x64xf32>
      %80 = vector.shape_cast %78 : vector<1x64xi1> to vector<1x64xi1>
      %81 = vector.broadcast %80 : vector<1x64xi1> to vector<8x64xi1>
      %82 = arith.select %81, %69, %79 : vector<8x64xi1>, vector<8x64xf32>
      %c0_39 = arith.constant 0 : index
      %c0_40 = arith.constant 0 : index
      %83 = vector.load %arg12[%c0_39, %c0_40] : memref<72x64xf32, #tpu.memory_space<vmem>>, vector<8x64xf32>
      tpu.vector_store %arg12[%c0_39, %c0_40], %82 {strides = array<i32>} : memref<72x64xf32, #tpu.memory_space<vmem>>, vector<8x64xf32>,
      %c0_41 = arith.constant 0 : index
      %c23 = arith.constant 23 : index
      %84 = vector.load %arg11[%c0_41, %c23] : memref<8x190xf32, #tpu.memory_space<vmem>>, vector<8x64xf32>
      %c8 = arith.constant 8 : index
      %c0_42 = arith.constant 0 : index
      %85 = vector.load %arg12[%c8, %c0_42] : memref<72x64xf32, #tpu.memory_space<vmem>>, vector<8x64xf32>
      tpu.vector_store %arg12[%c8, %c0_42], %84 {strides = array<i32>} : memref<72x64xf32, #tpu.memory_space<vmem>>, vector<8x64xf32>,
      %c0_43 = arith.constant 0 : index
      %c28 = arith.constant 28 : index
      %86 = vector.load %arg11[%c0_43, %c28] : memref<8x190xf32, #tpu.memory_space<vmem>>, vector<8x64xf32>
      %c5_i32 = arith.constant 5 : i32
      %87 = vector.broadcast %c5_i32 : i32 to vector<1x64xi32>
      %88 = arith.addi %19, %87 : vector<1x64xi32>
      %c0_i32_44 = arith.constant 0 : i32
      %89 = vector.broadcast %c0_i32_44 : i32 to vector<1x64xi32>
      %90 = arith.cmpi sge, %88, %89 : vector<1x64xi32>
      %c5_i32_45 = arith.constant 5 : i32
      %91 = vector.broadcast %c5_i32_45 : i32 to vector<1x64xi32>
      %92 = arith.addi %19, %91 : vector<1x64xi32>
      %c8_i32_46 = arith.constant 8 : i32
      %93 = vector.broadcast %c8_i32_46 : i32 to vector<1x64xi32>
      %94 = arith.cmpi slt, %92, %93 : vector<1x64xi32>
      %95 = arith.andi %90, %94 : vector<1x64xi1>
      %cst_47 = arith.constant 0.000000e+00 : f32
      %96 = vector.broadcast %cst_47 : f32 to vector<8x64xf32>
      %97 = vector.shape_cast %95 : vector<1x64xi1> to vector<1x64xi1>
      %98 = vector.broadcast %97 : vector<1x64xi1> to vector<8x64xi1>
      %99 = arith.select %98, %86, %96 : vector<8x64xi1>, vector<8x64xf32>
      %c16 = arith.constant 16 : index
      %c0_48 = arith.constant 0 : index
      %100 = vector.load %arg12[%c16, %c0_48] : memref<72x64xf32, #tpu.memory_space<vmem>>, vector<8x64xf32>
      tpu.vector_store %arg12[%c16, %c0_48], %99 {strides = array<i32>} : memref<72x64xf32, #tpu.memory_space<vmem>>, vector<8x64xf32>,
      %c0_49 = arith.constant 0 : index
      %c58 = arith.constant 58 : index
      %101 = vector.load %arg11[%c0_49, %c58] : memref<8x190xf32, #tpu.memory_space<vmem>>, vector<8x64xf32>
      %c-5_i32_50 = arith.constant -5 : i32
      %102 = vector.broadcast %c-5_i32_50 : i32 to vector<1x64xi32>
      %103 = arith.addi %19, %102 : vector<1x64xi32>
      %c0_i32_51 = arith.constant 0 : i32
      %104 = vector.broadcast %c0_i32_51 : i32 to vector<1x64xi32>
      %105 = arith.cmpi sge, %103, %104 : vector<1x64xi32>
      %c-5_i32_52 = arith.constant -5 : i32
      %106 = vector.broadcast %c-5_i32_52 : i32 to vector<1x64xi32>
      %107 = arith.addi %19, %106 : vector<1x64xi32>
      %c8_i32_53 = arith.constant 8 : i32
      %108 = vector.broadcast %c8_i32_53 : i32 to vector<1x64xi32>
      %109 = arith.cmpi slt, %107, %108 : vector<1x64xi32>
      %110 = arith.andi %105, %109 : vector<1x64xi1>
      %cst_54 = arith.constant 0.000000e+00 : f32
      %111 = vector.broadcast %cst_54 : f32 to vector<8x64xf32>
      %112 = vector.shape_cast %110 : vector<1x64xi1> to vector<1x64xi1>
      %113 = vector.broadcast %112 : vector<1x64xi1> to vector<8x64xi1>
      %114 = arith.select %113, %101, %111 : vector<8x64xi1>, vector<8x64xf32>
      %c24 = arith.constant 24 : index
      %c0_55 = arith.constant 0 : index
      %115 = vector.load %arg12[%c24, %c0_55] : memref<72x64xf32, #tpu.memory_space<vmem>>, vector<8x64xf32>
      tpu.vector_store %arg12[%c24, %c0_55], %114 {strides = array<i32>} : memref<72x64xf32, #tpu.memory_space<vmem>>, vector<8x64xf32>,
      %c0_56 = arith.constant 0 : index
      %c63 = arith.constant 63 : index
      %116 = vector.load %arg11[%c0_56, %c63] : memref<8x190xf32, #tpu.memory_space<vmem>>, vector<8x64xf32>
      %c32 = arith.constant 32 : index
      %c0_57 = arith.constant 0 : index
      %117 = vector.load %arg12[%c32, %c0_57] : memref<72x64xf32, #tpu.memory_space<vmem>>, vector<8x64xf32>
      tpu.vector_store %arg12[%c32, %c0_57], %116 {strides = array<i32>} : memref<72x64xf32, #tpu.memory_space<vmem>>, vector<8x64xf32>,
      %c0_58 = arith.constant 0 : index
      %c68 = arith.constant 68 : index
      %118 = vector.load %arg11[%c0_58, %c68] : memref<8x190xf32, #tpu.memory_space<vmem>>, vector<8x64xf32>
      %c5_i32_59 = arith.constant 5 : i32
      %119 = vector.broadcast %c5_i32_59 : i32 to vector<1x64xi32>
      %120 = arith.addi %19, %119 : vector<1x64xi32>
      %c0_i32_60 = arith.constant 0 : i32
      %121 = vector.broadcast %c0_i32_60 : i32 to vector<1x64xi32>
      %122 = arith.cmpi sge, %120, %121 : vector<1x64xi32>
      %c5_i32_61 = arith.constant 5 : i32
      %123 = vector.broadcast %c5_i32_61 : i32 to vector<1x64xi32>
      %124 = arith.addi %19, %123 : vector<1x64xi32>
      %c8_i32_62 = arith.constant 8 : i32
      %125 = vector.broadcast %c8_i32_62 : i32 to vector<1x64xi32>
      %126 = arith.cmpi slt, %124, %125 : vector<1x64xi32>
      %127 = arith.andi %122, %126 : vector<1x64xi1>
      %cst_63 = arith.constant 0.000000e+00 : f32
      %128 = vector.broadcast %cst_63 : f32 to vector<8x64xf32>
      %129 = vector.shape_cast %127 : vector<1x64xi1> to vector<1x64xi1>
      %130 = vector.broadcast %129 : vector<1x64xi1> to vector<8x64xi1>
      %131 = arith.select %130, %118, %128 : vector<8x64xi1>, vector<8x64xf32>
      %c40 = arith.constant 40 : index
      %c0_64 = arith.constant 0 : index
      %132 = vector.load %arg12[%c40, %c0_64] : memref<72x64xf32, #tpu.memory_space<vmem>>, vector<8x64xf32>
      tpu.vector_store %arg12[%c40, %c0_64], %131 {strides = array<i32>} : memref<72x64xf32, #tpu.memory_space<vmem>>, vector<8x64xf32>,
      %c0_65 = arith.constant 0 : index
      %c98 = arith.constant 98 : index
      %133 = vector.load %arg11[%c0_65, %c98] : memref<8x190xf32, #tpu.memory_space<vmem>>, vector<8x64xf32>
      %c-5_i32_66 = arith.constant -5 : i32
      %134 = vector.broadcast %c-5_i32_66 : i32 to vector<1x64xi32>
      %135 = arith.addi %19, %134 : vector<1x64xi32>
      %c0_i32_67 = arith.constant 0 : i32
      %136 = vector.broadcast %c0_i32_67 : i32 to vector<1x64xi32>
      %137 = arith.cmpi sge, %135, %136 : vector<1x64xi32>
      %c-5_i32_68 = arith.constant -5 : i32
      %138 = vector.broadcast %c-5_i32_68 : i32 to vector<1x64xi32>
      %139 = arith.addi %19, %138 : vector<1x64xi32>
      %c8_i32_69 = arith.constant 8 : i32
      %140 = vector.broadcast %c8_i32_69 : i32 to vector<1x64xi32>
      %141 = arith.cmpi slt, %139, %140 : vector<1x64xi32>
      %142 = arith.andi %137, %141 : vector<1x64xi1>
      %cst_70 = arith.constant 0.000000e+00 : f32
      %143 = vector.broadcast %cst_70 : f32 to vector<8x64xf32>
      %144 = vector.shape_cast %142 : vector<1x64xi1> to vector<1x64xi1>
      %145 = vector.broadcast %144 : vector<1x64xi1> to vector<8x64xi1>
      %146 = arith.select %145, %133, %143 : vector<8x64xi1>, vector<8x64xf32>
      %c48 = arith.constant 48 : index
      %c0_71 = arith.constant 0 : index
      %147 = vector.load %arg12[%c48, %c0_71] : memref<72x64xf32, #tpu.memory_space<vmem>>, vector<8x64xf32>
      tpu.vector_store %arg12[%c48, %c0_71], %146 {strides = array<i32>} : memref<72x64xf32, #tpu.memory_space<vmem>>, vector<8x64xf32>,
      %c0_72 = arith.constant 0 : index
      %c103 = arith.constant 103 : index
      %148 = vector.load %arg11[%c0_72, %c103] : memref<8x190xf32, #tpu.memory_space<vmem>>, vector<8x64xf32>
      %c56 = arith.constant 56 : index
      %c0_73 = arith.constant 0 : index
      %149 = vector.load %arg12[%c56, %c0_73] : memref<72x64xf32, #tpu.memory_space<vmem>>, vector<8x64xf32>
      tpu.vector_store %arg12[%c56, %c0_73], %148 {strides = array<i32>} : memref<72x64xf32, #tpu.memory_space<vmem>>, vector<8x64xf32>,
      %c0_74 = arith.constant 0 : index
      %c108 = arith.constant 108 : index
      %150 = vector.load %arg11[%c0_74, %c108] : memref<8x190xf32, #tpu.memory_space<vmem>>, vector<8x64xf32>
      %c5_i32_75 = arith.constant 5 : i32
      %151 = vector.broadcast %c5_i32_75 : i32 to vector<1x64xi32>
      %152 = arith.addi %19, %151 : vector<1x64xi32>
      %c0_i32_76 = arith.constant 0 : i32
      %153 = vector.broadcast %c0_i32_76 : i32 to vector<1x64xi32>
      %154 = arith.cmpi sge, %152, %153 : vector<1x64xi32>
      %c5_i32_77 = arith.constant 5 : i32
      %155 = vector.broadcast %c5_i32_77 : i32 to vector<1x64xi32>
      %156 = arith.addi %19, %155 : vector<1x64xi32>
      %c8_i32_78 = arith.constant 8 : i32
      %157 = vector.broadcast %c8_i32_78 : i32 to vector<1x64xi32>
      %158 = arith.cmpi slt, %156, %157 : vector<1x64xi32>
      %159 = arith.andi %154, %158 : vector<1x64xi1>
      %cst_79 = arith.constant 0.000000e+00 : f32
      %160 = vector.broadcast %cst_79 : f32 to vector<8x64xf32>
      %161 = vector.shape_cast %159 : vector<1x64xi1> to vector<1x64xi1>
      %162 = vector.broadcast %161 : vector<1x64xi1> to vector<8x64xi1>
      %163 = arith.select %162, %150, %160 : vector<8x64xi1>, vector<8x64xf32>
      %c64 = arith.constant 64 : index
      %c0_80 = arith.constant 0 : index
      %164 = vector.load %arg12[%c64, %c0_80] : memref<72x64xf32, #tpu.memory_space<vmem>>, vector<8x64xf32>
      tpu.vector_store %arg12[%c64, %c0_80], %163 {strides = array<i32>} : memref<72x64xf32, #tpu.memory_space<vmem>>, vector<8x64xf32>,
    } else {
    }
    %c2_i32 = arith.constant 2 : i32
    %26 = arith.cmpi eq, %arg1, %c2_i32 : i32
    %27 = arith.extui %26 : i1 to i32
    %c0_i32_9 = arith.constant 0 : i32
    %28 = arith.cmpi ne, %27, %c0_i32_9 : i32
    scf.if %28 {
      %c0_34 = arith.constant 0 : index
      %c0_35 = arith.constant 0 : index
      %69 = vector.load %arg11[%c0_34, %c0_35] : memref<8x190xf32, #tpu.memory_space<vmem>>, vector<8x64xf32>
      %c-7_i32 = arith.constant -7 : i32
      %70 = vector.broadcast %c-7_i32 : i32 to vector<1x64xi32>
      %71 = arith.addi %19, %70 : vector<1x64xi32>
      %c0_i32_36 = arith.constant 0 : i32
      %72 = vector.broadcast %c0_i32_36 : i32 to vector<1x64xi32>
      %73 = arith.cmpi sge, %71, %72 : vector<1x64xi32>
      %c-7_i32_37 = arith.constant -7 : i32
      %74 = vector.broadcast %c-7_i32_37 : i32 to vector<1x64xi32>
      %75 = arith.addi %19, %74 : vector<1x64xi32>
      %c8_i32_38 = arith.constant 8 : i32
      %76 = vector.broadcast %c8_i32_38 : i32 to vector<1x64xi32>
      %77 = arith.cmpi slt, %75, %76 : vector<1x64xi32>
      %78 = arith.andi %73, %77 : vector<1x64xi1>
      %cst_39 = arith.constant 0.000000e+00 : f32
      %79 = vector.broadcast %cst_39 : f32 to vector<8x64xf32>
      %80 = vector.shape_cast %78 : vector<1x64xi1> to vector<1x64xi1>
      %81 = vector.broadcast %80 : vector<1x64xi1> to vector<8x64xi1>
      %82 = arith.select %81, %69, %79 : vector<8x64xi1>, vector<8x64xf32>
      %c0_40 = arith.constant 0 : index
      %c0_41 = arith.constant 0 : index
      %83 = vector.load %arg12[%c0_40, %c0_41] : memref<72x64xf32, #tpu.memory_space<vmem>>, vector<8x64xf32>
      tpu.vector_store %arg12[%c0_40, %c0_41], %82 {strides = array<i32>} : memref<72x64xf32, #tpu.memory_space<vmem>>, vector<8x64xf32>,
      %c0_42 = arith.constant 0 : index
      %c7 = arith.constant 7 : index
      %84 = vector.load %arg11[%c0_42, %c7] : memref<8x190xf32, #tpu.memory_space<vmem>>, vector<8x64xf32>
      %c8 = arith.constant 8 : index
      %c0_43 = arith.constant 0 : index
      %85 = vector.load %arg12[%c8, %c0_43] : memref<72x64xf32, #tpu.memory_space<vmem>>, vector<8x64xf32>
      tpu.vector_store %arg12[%c8, %c0_43], %84 {strides = array<i32>} : memref<72x64xf32, #tpu.memory_space<vmem>>, vector<8x64xf32>,
      %c0_44 = arith.constant 0 : index
      %c14 = arith.constant 14 : index
      %86 = vector.load %arg11[%c0_44, %c14] : memref<8x190xf32, #tpu.memory_space<vmem>>, vector<8x64xf32>
      %c7_i32 = arith.constant 7 : i32
      %87 = vector.broadcast %c7_i32 : i32 to vector<1x64xi32>
      %88 = arith.addi %19, %87 : vector<1x64xi32>
      %c0_i32_45 = arith.constant 0 : i32
      %89 = vector.broadcast %c0_i32_45 : i32 to vector<1x64xi32>
      %90 = arith.cmpi sge, %88, %89 : vector<1x64xi32>
      %c7_i32_46 = arith.constant 7 : i32
      %91 = vector.broadcast %c7_i32_46 : i32 to vector<1x64xi32>
      %92 = arith.addi %19, %91 : vector<1x64xi32>
      %c8_i32_47 = arith.constant 8 : i32
      %93 = vector.broadcast %c8_i32_47 : i32 to vector<1x64xi32>
      %94 = arith.cmpi slt, %92, %93 : vector<1x64xi32>
      %95 = arith.andi %90, %94 : vector<1x64xi1>
      %cst_48 = arith.constant 0.000000e+00 : f32
      %96 = vector.broadcast %cst_48 : f32 to vector<8x64xf32>
      %97 = vector.shape_cast %95 : vector<1x64xi1> to vector<1x64xi1>
      %98 = vector.broadcast %97 : vector<1x64xi1> to vector<8x64xi1>
      %99 = arith.select %98, %86, %96 : vector<8x64xi1>, vector<8x64xf32>
      %c16 = arith.constant 16 : index
      %c0_49 = arith.constant 0 : index
      %100 = vector.load %arg12[%c16, %c0_49] : memref<72x64xf32, #tpu.memory_space<vmem>>, vector<8x64xf32>
      tpu.vector_store %arg12[%c16, %c0_49], %99 {strides = array<i32>} : memref<72x64xf32, #tpu.memory_space<vmem>>, vector<8x64xf32>,
      %c0_50 = arith.constant 0 : index
      %c56 = arith.constant 56 : index
      %101 = vector.load %arg11[%c0_50, %c56] : memref<8x190xf32, #tpu.memory_space<vmem>>, vector<8x64xf32>
      %c-7_i32_51 = arith.constant -7 : i32
      %102 = vector.broadcast %c-7_i32_51 : i32 to vector<1x64xi32>
      %103 = arith.addi %19, %102 : vector<1x64xi32>
      %c0_i32_52 = arith.constant 0 : i32
      %104 = vector.broadcast %c0_i32_52 : i32 to vector<1x64xi32>
      %105 = arith.cmpi sge, %103, %104 : vector<1x64xi32>
      %c-7_i32_53 = arith.constant -7 : i32
      %106 = vector.broadcast %c-7_i32_53 : i32 to vector<1x64xi32>
      %107 = arith.addi %19, %106 : vector<1x64xi32>
      %c8_i32_54 = arith.constant 8 : i32
      %108 = vector.broadcast %c8_i32_54 : i32 to vector<1x64xi32>
      %109 = arith.cmpi slt, %107, %108 : vector<1x64xi32>
      %110 = arith.andi %105, %109 : vector<1x64xi1>
      %cst_55 = arith.constant 0.000000e+00 : f32
      %111 = vector.broadcast %cst_55 : f32 to vector<8x64xf32>
      %112 = vector.shape_cast %110 : vector<1x64xi1> to vector<1x64xi1>
      %113 = vector.broadcast %112 : vector<1x64xi1> to vector<8x64xi1>
      %114 = arith.select %113, %101, %111 : vector<8x64xi1>, vector<8x64xf32>
      %c24 = arith.constant 24 : index
      %c0_56 = arith.constant 0 : index
      %115 = vector.load %arg12[%c24, %c0_56] : memref<72x64xf32, #tpu.memory_space<vmem>>, vector<8x64xf32>
      tpu.vector_store %arg12[%c24, %c0_56], %114 {strides = array<i32>} : memref<72x64xf32, #tpu.memory_space<vmem>>, vector<8x64xf32>,
      %c0_57 = arith.constant 0 : index
      %c63 = arith.constant 63 : index
      %116 = vector.load %arg11[%c0_57, %c63] : memref<8x190xf32, #tpu.memory_space<vmem>>, vector<8x64xf32>
      %c32 = arith.constant 32 : index
      %c0_58 = arith.constant 0 : index
      %117 = vector.load %arg12[%c32, %c0_58] : memref<72x64xf32, #tpu.memory_space<vmem>>, vector<8x64xf32>
      tpu.vector_store %arg12[%c32, %c0_58], %116 {strides = array<i32>} : memref<72x64xf32, #tpu.memory_space<vmem>>, vector<8x64xf32>,
      %c0_59 = arith.constant 0 : index
      %c70 = arith.constant 70 : index
      %118 = vector.load %arg11[%c0_59, %c70] : memref<8x190xf32, #tpu.memory_space<vmem>>, vector<8x64xf32>
      %c7_i32_60 = arith.constant 7 : i32
      %119 = vector.broadcast %c7_i32_60 : i32 to vector<1x64xi32>
      %120 = arith.addi %19, %119 : vector<1x64xi32>
      %c0_i32_61 = arith.constant 0 : i32
      %121 = vector.broadcast %c0_i32_61 : i32 to vector<1x64xi32>
      %122 = arith.cmpi sge, %120, %121 : vector<1x64xi32>
      %c7_i32_62 = arith.constant 7 : i32
      %123 = vector.broadcast %c7_i32_62 : i32 to vector<1x64xi32>
      %124 = arith.addi %19, %123 : vector<1x64xi32>
      %c8_i32_63 = arith.constant 8 : i32
      %125 = vector.broadcast %c8_i32_63 : i32 to vector<1x64xi32>
      %126 = arith.cmpi slt, %124, %125 : vector<1x64xi32>
      %127 = arith.andi %122, %126 : vector<1x64xi1>
      %cst_64 = arith.constant 0.000000e+00 : f32
      %128 = vector.broadcast %cst_64 : f32 to vector<8x64xf32>
      %129 = vector.shape_cast %127 : vector<1x64xi1> to vector<1x64xi1>
      %130 = vector.broadcast %129 : vector<1x64xi1> to vector<8x64xi1>
      %131 = arith.select %130, %118, %128 : vector<8x64xi1>, vector<8x64xf32>
      %c40 = arith.constant 40 : index
      %c0_65 = arith.constant 0 : index
      %132 = vector.load %arg12[%c40, %c0_65] : memref<72x64xf32, #tpu.memory_space<vmem>>, vector<8x64xf32>
      tpu.vector_store %arg12[%c40, %c0_65], %131 {strides = array<i32>} : memref<72x64xf32, #tpu.memory_space<vmem>>, vector<8x64xf32>,
      %c0_66 = arith.constant 0 : index
      %c112 = arith.constant 112 : index
      %133 = vector.load %arg11[%c0_66, %c112] : memref<8x190xf32, #tpu.memory_space<vmem>>, vector<8x64xf32>
      %c-7_i32_67 = arith.constant -7 : i32
      %134 = vector.broadcast %c-7_i32_67 : i32 to vector<1x64xi32>
      %135 = arith.addi %19, %134 : vector<1x64xi32>
      %c0_i32_68 = arith.constant 0 : i32
      %136 = vector.broadcast %c0_i32_68 : i32 to vector<1x64xi32>
      %137 = arith.cmpi sge, %135, %136 : vector<1x64xi32>
      %c-7_i32_69 = arith.constant -7 : i32
      %138 = vector.broadcast %c-7_i32_69 : i32 to vector<1x64xi32>
      %139 = arith.addi %19, %138 : vector<1x64xi32>
      %c8_i32_70 = arith.constant 8 : i32
      %140 = vector.broadcast %c8_i32_70 : i32 to vector<1x64xi32>
      %141 = arith.cmpi slt, %139, %140 : vector<1x64xi32>
      %142 = arith.andi %137, %141 : vector<1x64xi1>
      %cst_71 = arith.constant 0.000000e+00 : f32
      %143 = vector.broadcast %cst_71 : f32 to vector<8x64xf32>
      %144 = vector.shape_cast %142 : vector<1x64xi1> to vector<1x64xi1>
      %145 = vector.broadcast %144 : vector<1x64xi1> to vector<8x64xi1>
      %146 = arith.select %145, %133, %143 : vector<8x64xi1>, vector<8x64xf32>
      %c48 = arith.constant 48 : index
      %c0_72 = arith.constant 0 : index
      %147 = vector.load %arg12[%c48, %c0_72] : memref<72x64xf32, #tpu.memory_space<vmem>>, vector<8x64xf32>
      tpu.vector_store %arg12[%c48, %c0_72], %146 {strides = array<i32>} : memref<72x64xf32, #tpu.memory_space<vmem>>, vector<8x64xf32>,
      %c0_73 = arith.constant 0 : index
      %c119 = arith.constant 119 : index
      %148 = vector.load %arg11[%c0_73, %c119] : memref<8x190xf32, #tpu.memory_space<vmem>>, vector<8x64xf32>
      %c56_74 = arith.constant 56 : index
      %c0_75 = arith.constant 0 : index
      %149 = vector.load %arg12[%c56_74, %c0_75] : memref<72x64xf32, #tpu.memory_space<vmem>>, vector<8x64xf32>
      tpu.vector_store %arg12[%c56_74, %c0_75], %148 {strides = array<i32>} : memref<72x64xf32, #tpu.memory_space<vmem>>, vector<8x64xf32>,
      %c0_76 = arith.constant 0 : index
      %c126 = arith.constant 126 : index
      %150 = vector.load %arg11[%c0_76, %c126] : memref<8x190xf32, #tpu.memory_space<vmem>>, vector<8x64xf32>
      %c7_i32_77 = arith.constant 7 : i32
      %151 = vector.broadcast %c7_i32_77 : i32 to vector<1x64xi32>
      %152 = arith.addi %19, %151 : vector<1x64xi32>
      %c0_i32_78 = arith.constant 0 : i32
      %153 = vector.broadcast %c0_i32_78 : i32 to vector<1x64xi32>
      %154 = arith.cmpi sge, %152, %153 : vector<1x64xi32>
      %c7_i32_79 = arith.constant 7 : i32
      %155 = vector.broadcast %c7_i32_79 : i32 to vector<1x64xi32>
      %156 = arith.addi %19, %155 : vector<1x64xi32>
      %c8_i32_80 = arith.constant 8 : i32
      %157 = vector.broadcast %c8_i32_80 : i32 to vector<1x64xi32>
      %158 = arith.cmpi slt, %156, %157 : vector<1x64xi32>
      %159 = arith.andi %154, %158 : vector<1x64xi1>
      %cst_81 = arith.constant 0.000000e+00 : f32
      %160 = vector.broadcast %cst_81 : f32 to vector<8x64xf32>
      %161 = vector.shape_cast %159 : vector<1x64xi1> to vector<1x64xi1>
      %162 = vector.broadcast %161 : vector<1x64xi1> to vector<8x64xi1>
      %163 = arith.select %162, %150, %160 : vector<8x64xi1>, vector<8x64xf32>
      %c64 = arith.constant 64 : index
      %c0_82 = arith.constant 0 : index
      %164 = vector.load %arg12[%c64, %c0_82] : memref<72x64xf32, #tpu.memory_space<vmem>>, vector<8x64xf32>
      tpu.vector_store %arg12[%c64, %c0_82], %163 {strides = array<i32>} : memref<72x64xf32, #tpu.memory_space<vmem>>, vector<8x64xf32>,
    } else {
    }
    %c0 = arith.constant 0 : index
    %c0_10 = arith.constant 0 : index
    %c0_11 = arith.constant 0 : index
    %29 = vector.load %arg5[%c0, %c0_10, %c0_11] : memref<1x8x72xf32, #tpu.memory_space<vmem>>, vector<1x8x72xf32>
    %30 = vector.shape_cast %29 : vector<1x8x72xf32> to vector<8x72xf32>
    %c0_12 = arith.constant 0 : index
    %c0_13 = arith.constant 0 : index
    %31 = vector.load %arg12[%c0_12, %c0_13] : memref<72x64xf32, #tpu.memory_space<vmem>>, vector<72x64xf32>
    %cst = arith.constant dense<0.000000e+00> : vector<8x64xf32>
    %32 = tpu.matmul %30, %31, %cst {dimension_numbers = #tpu.dot_dimension_numbers<[1], [0], [0], [1], [0, 0, 1, 1], [], []>} : vector<8x72xf32>, vector<72x64xf32>, vector<8x64xf32> -> vector<8x64xf32>
    %c0_14 = arith.constant 0 : index
    %c0_15 = arith.constant 0 : index
    %c0_16 = arith.constant 0 : index
    %33 = vector.load %arg6[%c0_14, %c0_15, %c0_16] : memref<1x8x1xf32, #tpu.memory_space<vmem>>, vector<1x8x1xf32>
    %34 = vector.shape_cast %33 : vector<1x8x1xf32> to vector<8x1xf32>
    %35 = vector.broadcast %34 : vector<8x1xf32> to vector<8x64xf32>
    %36 = arith.addf %32, %35 : vector<8x64xf32>
    %cst_17 = arith.constant 0.000000e+00 : f32
    %37 = vector.broadcast %cst_17 : f32 to vector<8x64xf32>
    %38 = arith.cmpf oge, %36, %37 : vector<8x64xf32>
    %cst_18 = arith.constant 2.000000e-01 : f32
    %39 = vector.broadcast %cst_18 : f32 to vector<8x64xf32>
    %40 = arith.mulf %39, %36 : vector<8x64xf32>
    %41 = arith.select %38, %36, %40 : vector<8x64xi1>, vector<8x64xf32>
    %cst_19 = arith.constant dense<0.000000e+00> : vector<8xf32>
    %42 = vector.multi_reduction <add>, %41, %cst_19 [1] : vector<8x64xf32> to vector<8xf32>
    %43 = vector.shape_cast %42 : vector<8xf32> to vector<8x1xf32>
    %cst_20 = arith.constant 1.562500e-02 : f32
    %44 = vector.broadcast %cst_20 : f32 to vector<8x1xf32>
    %45 = arith.mulf %43, %44 : vector<8x1xf32>
    %46 = arith.mulf %41, %41 : vector<8x64xf32>
    %cst_21 = arith.constant dense<0.000000e+00> : vector<8xf32>
    %47 = vector.multi_reduction <add>, %46, %cst_21 [1] : vector<8x64xf32> to vector<8xf32>
    %48 = vector.shape_cast %47 : vector<8xf32> to vector<8x1xf32>
    %cst_22 = arith.constant 1.562500e-02 : f32
    %49 = vector.broadcast %cst_22 : f32 to vector<8x1xf32>
    %50 = arith.mulf %48, %49 : vector<8x1xf32>
    %51 = vector.broadcast %45 : vector<8x1xf32> to vector<8x64xf32>
    %52 = arith.subf %41, %51 : vector<8x64xf32>
    %53 = arith.mulf %45, %45 : vector<8x1xf32>
    %54 = arith.subf %50, %53 : vector<8x1xf32>
    %cst_23 = arith.constant 9.99999974E-6 : f32
    %55 = vector.broadcast %cst_23 : f32 to vector<8x1xf32>
    %56 = arith.addf %54, %55 : vector<8x1xf32>
    %57 = math.rsqrt %56 : vector<8x1xf32>
    %58 = vector.broadcast %57 : vector<8x1xf32> to vector<8x64xf32>
    %59 = arith.mulf %52, %58 : vector<8x64xf32>
    %c0_24 = arith.constant 0 : index
    %c0_25 = arith.constant 0 : index
    %60 = vector.load %arg13[%c0_24, %c0_25] : memref<8x64xf32, #tpu.memory_space<vmem>>, vector<8x64xf32>
    %c0_26 = arith.constant 0 : index
    %c0_27 = arith.constant 0 : index
    %c0_28 = arith.constant 0 : index
    %61 = vector.load %arg7[%c0_26, %c0_27, %c0_28] : memref<1x8x8xf32, #tpu.memory_space<vmem>>, vector<1x8x8xf32>
    %62 = vector.shape_cast %61 : vector<1x8x8xf32> to vector<8x8xf32>
    %cst_29 = arith.constant dense<0.000000e+00> : vector<8x64xf32>
    %63 = tpu.matmul %62, %59, %cst_29 {dimension_numbers = #tpu.dot_dimension_numbers<[1], [0], [0], [1], [0, 0, 1, 1], [], []>} : vector<8x8xf32>, vector<8x64xf32>, vector<8x64xf32> -> vector<8x64xf32>
    %64 = arith.addf %60, %63 : vector<8x64xf32>
    %c0_30 = arith.constant 0 : index
    %c0_31 = arith.constant 0 : index
    %65 = vector.load %arg13[%c0_30, %c0_31] : memref<8x64xf32, #tpu.memory_space<vmem>>, vector<8x64xf32>
    tpu.vector_store %arg13[%c0_30, %c0_31], %64 {strides = array<i32>} : memref<8x64xf32, #tpu.memory_space<vmem>>, vector<8x64xf32>,
    %c2_i32_32 = arith.constant 2 : i32
    %66 = arith.cmpi eq, %arg1, %c2_i32_32 : i32
    %67 = arith.extui %66 : i1 to i32
    %c0_i32_33 = arith.constant 0 : i32
    %68 = arith.cmpi ne, %67, %c0_i32_33 : i32
    scf.if %68 {
      %c0_34 = arith.constant 0 : index
      %c0_35 = arith.constant 0 : index
      %69 = vector.load %arg13[%c0_34, %c0_35] : memref<8x64xf32, #tpu.memory_space<vmem>>, vector<8x64xf32>
      %c0_36 = arith.constant 0 : index
      %c0_37 = arith.constant 0 : index
      %c0_38 = arith.constant 0 : index
      %70 = vector.load %arg10[%c0_36, %c0_37, %c0_38] : memref<1x8x64xf32, #tpu.memory_space<vmem>>, vector<1x8x64xf32>
      %71 = vector.shape_cast %70 : vector<1x8x64xf32> to vector<8x64xf32>
      %72 = vector.shape_cast %69 : vector<8x64xf32> to vector<1x8x64xf32>
      tpu.vector_store %arg10[%c0_36, %c0_37, %c0_38], %72 {strides = array<i32>} : memref<1x8x64xf32, #tpu.memory_space<vmem>>, vector<1x8x64xf32>,
    } else {
    }
    return
  }
  func.func @transform_0(%arg0: i32, %arg1: i32) -> (i32, i32, i32) {
    %c0_i32 = arith.constant 0 : i32
    %c0_i32_0 = arith.constant 0 : i32
    %c0_i32_1 = arith.constant 0 : i32
    return %arg0, %c0_i32, %c0_i32_0 : i32, i32, i32
  }
  func.func @transform_1(%arg0: i32, %arg1: i32) -> (i32, i32) {
    %c0_i32 = arith.constant 0 : i32
    %c0_i32_0 = arith.constant 0 : i32
    %c0_i32_1 = arith.constant 0 : i32
    return %c0_i32, %c0_i32_0 : i32, i32
  }
  func.func @transform_2(%arg0: i32, %arg1: i32) -> (i32, i32) {
    %c0_i32 = arith.constant 0 : i32
    %c0_i32_0 = arith.constant 0 : i32
    %c0_i32_1 = arith.constant 0 : i32
    return %c0_i32, %c0_i32_0 : i32, i32
  }
  func.func @transform_3(%arg0: i32, %arg1: i32) -> (i32, i32, i32) {
    %c0_i32 = arith.constant 0 : i32
    %c0_i32_0 = arith.constant 0 : i32
    %c0_i32_1 = arith.constant 0 : i32
    return %arg1, %c0_i32, %c0_i32_0 : i32, i32, i32
  }
  func.func @transform_4(%arg0: i32, %arg1: i32) -> (i32, i32, i32) {
    %c0_i32 = arith.constant 0 : i32
    %c0_i32_0 = arith.constant 0 : i32
    %c0_i32_1 = arith.constant 0 : i32
    return %arg1, %c0_i32, %c0_i32_0 : i32, i32, i32
  }
  func.func @transform_5(%arg0: i32, %arg1: i32) -> (i32, i32, i32) {
    %c0_i32 = arith.constant 0 : i32
    %c0_i32_0 = arith.constant 0 : i32
    %c0_i32_1 = arith.constant 0 : i32
    return %arg1, %c0_i32, %c0_i32_0 : i32, i32, i32
  }
  func.func @transform_6(%arg0: i32, %arg1: i32) -> (i32, i32) {
    %c0_i32 = arith.constant 0 : i32
    %c0_i32_0 = arith.constant 0 : i32
    %c0_i32_1 = arith.constant 0 : i32
    return %c0_i32, %c0_i32_0 : i32, i32
  }
  func.func @transform_7(%arg0: i32, %arg1: i32) -> (i32, i32) {
    %c0_i32 = arith.constant 0 : i32
    %c0_i32_0 = arith.constant 0 : i32
    %c0_i32_1 = arith.constant 0 : i32
    return %c0_i32, %c0_i32_0 : i32, i32
  }
  func.func @transform_8(%arg0: i32, %arg1: i32) -> (i32, i32, i32) {
    %c0_i32 = arith.constant 0 : i32
    %c0_i32_0 = arith.constant 0 : i32
    %c0_i32_1 = arith.constant 0 : i32
    return %arg0, %c0_i32, %c0_i32_0 : i32, i32, i32
  }
}

</mosaic_0001>

<bundles_post_ra>
// kernel: tpu_custom_call.1
= control target key start
LH: loop header
LB: loop body
LE: loop exit
PB: predicated region body
PF: predicated region fallthrough
CT: control target
= control target key end

     0   :  { %s2144_s0 = inlined_call_operand.hbm [shape: f32[2,64,64], index: 0, kind: input, shape index: {}]   ;;  %s2145_s1 = inlined_call_operand.hbm [shape: f32[8,64], index: 1, kind: input, shape index: {}]   ;;  %s2146_s2 = inlined_call_operand.vmem [shape: f32[8,1], index: 2, kind: input, shape index: {}]   ;;  %s2147_s3 = inlined_call_operand.vmem [shape: f32[3,8,72], index: 3, kind: input, shape index: {}]   ;;  %s2148_s4 = inlined_call_operand.vmem [shape: f32[3,8,1], index: 4, kind: input, shape index: {}]   ;;  %s2149_s5 = inlined_call_operand.vmem [shape: f32[3,8,8], index: 5, kind: input, shape index: {}]   ;;  %s2150_s6 = inlined_call_operand.vmem [shape: f32[8,8], index: 6, kind: input, shape index: {}]   ;;  %s2151_s7 = inlined_call_operand.vmem [shape: f32[8,1], index: 7, kind: input, shape index: {}]   ;;  %s2152_s8 = inlined_call_operand.hbm [shape: f32[2,8,64], index: 8, kind: output, shape index: {}]  }
   0x1   :  { %2164 = sst [smem:[#allocation19_spill]] %s2145_s1 }
   0x2   :  { %13 = vsyncpa [#allocation6], 0 }
   0x3   :  { %15 = vsyncpa [#allocation6 + $0x1], 0 }
   0x4   :  { %16 = vsyncpa [#allocation9], 0 }
   0x5   :  { %17 = vsyncpa [#allocation7], 0 }
   0x6   :  { %19 = vsyncpa [#allocation7 + $0x1], 0  ;;  %s1785_s27 = smov 0   ;;  %s1787_s28 = smov 0  }
   0x7   :  { %s1789_s29 = smov 0   ;;  %s1791_s30 = smov 0  }
   0x8   :  { %s1793_s9 = smov 0   ;;  %s1795_s10 = smov 0  }
   0x9   :  { %s1797_s11 = smov 0   ;;  %s1799_s12 = smov 0  }
   0xa LB: > { %2165 = sst [smem:[#allocation14_spill]] %s1670_s27  ;;  %s1279_s13 = sadd.s32 4294967295, %s1698_s12   ;;  %s1698_s12 = sphi %s1799_s12, %s25_s12   ;;  %s1694_s11 = sphi %s1797_s11, %s2198_s11   ;;  %s1690_s10 = sphi %s1795_s10, %s2197_s10   ;;  %s1686_s9 = sphi %s1793_s9, %s2196_s9   ;;  %s1682_s30 = sphi %s1791_s30, %s2195_s30   ;;  %s1678_s29 = sphi %s1789_s29, %s2194_s29   ;;  %s1674_s28 = sphi %s1787_s28, %s2193_s28   ;;  %s1670_s27 = sphi %s1785_s27, %s2192_s27  }
   0xb   : > { %2166 = sst [smem:[#allocation15_spill]] %s1698_s12  ;;  %s1280_s14 = sadd.s32 4294967294, %s1698_s12  }
   0xc   : > { %p51_p0 = scmp.ne.s32.totalorder %s1678_s29, %s1674_s28  ;;  %p52_p1 = scmp.eq.s32.totalorder %s1698_s12, 0 }
   0xd   : > { %p57_p2 = scmp.ne.s32.totalorder %s1674_s28, %s1670_s27  ;;  %p1833_p3 = scmp.eq.s32.totalorder %s1279_s13, 0 }
   0xe   : > { %p243_p4 = scmp.eq.s32.totalorder %s1279_s13, 5  ;;  %p1837_p5 = por %p52_p1, %p51_p0 }
   0xf   : > { %s2167_s16 = scalar_select %p1833_p3, 1, 0 }
  0x10   : > { %p249_p6 = scmp.eq.s32.totalorder %s1280_s14, 5  ;;  %p1843_p7 = por %p1833_p3, %p57_p2 }
  0x11   : > { %p1847_p8 = por %p243_p4, %p51_p0  ;;  %p1281_p10 = scmp.ge.s32.totalorder %s1698_s12, 1 }
  0x12   : > { %s2169_s18 = scalar_select %p1843_p7, 1, 0 }
  0x13   : > { %s2170_s19 = scalar_select %p1847_p8, 1, 0 }
  0x14   : > { %p1851_p9 = por %p249_p6, %p57_p2  ;;  %p256_p11 = scmp.lt.s32.totalorder %s1698_s12, 7 }
  0x15   : > { %s1700_s22 = smov [#allocation8]   ;;  %p1426_p13 = scmp.lt.s32.totalorder %s1698_s12, 6 }
  0x16   : > { %s2171_s20 = scalar_select %p1851_p9, 1, 0 }
  0x17   : > { %p1857_p12 = pnand %p1281_p10, %p256_p11  ;;  %s269_s23 = sshll.u32 %s1700_s22, 4  ;;  %s270_s23 = int_to_ptr.vmem [resolvable:$true] %s269_s23 }
  0x18   : > { %2172 = sst [smem:[#allocation16_spill]] %s2171_s20  ;;  %p1866_p1 = pnand %p1426_p13, %p1837_p5 }
  0x19   : > { %s2173_s21 = scalar_select %p1857_p12, 1, 0 }
  0x1a   : > { %p1413_p0 = pneg %p1857_p12  ;;  %s34_s26 = sadd.s32 1, %s1690_s10 }
  0x1b   : > { %s2174_s24 = scalar_select %p1866_p1, 1, 0 }
  0x1c   : > { %p1872_p2 = pnand %p1413_p0, %p1833_p3  ;;  %s2176_s1 = sld [smem:[#allocation19_spill]] }
  0x1e   : > { %p1540_p5 = pneg %p1872_p2 }
  0x22   : > { %s1538_s22 = scalar_lea.hbm %s2176_s1, 128 }
  0x23   : > { %p1539_p4 = scmp.ne.s32.totalorder %s2176_s1, %s1538_s22  ;;  %p1545_p11 = scmp.lt.u32.totalorder %s1538_s22, %s2176_s1 }
  0x25   : > { %p1541_p6 = pnand %p1540_p5, %p1539_p4 }
  0x27   : > { %p1542_p10 = pneg %p1541_p6 }
  0x29   : > { %p1547_p13 = pnand %p1545_p11, %p1542_p10 }
  0x2b   : > { %1550 = shalt.err (!%p1547_p13)
}
  0x2c   : > { %s1551_s12 = scalar_lea.vmem %s270_s23, 128  ;;  %p1559_p3 = scmp.lt.s32.totalorder %s270_s23, %s270_s23 }
  0x2d   : > { %p1552_p0 = scmp.ne.s32.totalorder %s270_s23, %s1551_s12  ;;  %p1560_p7 = scmp.lt.s32.totalorder %s1551_s12, %s1551_s12 }
  0x2f   : > { %p1554_p9 = pnand %p1552_p0, %p1540_p5  ;;  %p1561_p12 = por %p1560_p7, %p1559_p3 }
  0x31   : > { %p1555_p8 = pneg %p1554_p9 }
  0x33   : > { %p1562_p1 = pnand %p1561_p12, %p1555_p8 }
  0x35   : > { %1565 = shalt.err (!%p1562_p1)
}
  0x36   : > { %1416 = dma.hbm_to_vmem [thread:$0]  (!%p1872_p2), %s2176_s1, 128, %s270_s23, [#allocation9]  }
  0x37   : > { %p35_p4 = scmp.ge.s32.totalorder %s34_s26, 3  ;;  %s37_s27 = sadd.s32 1, %s1694_s11 }
  0x38   : > { %s289_s13 = sand.u32 1, %s1678_s29   ;;  %s1307_s14 = sshll.u32 %s1694_s11, 10 }
  0x39   : > { %s2200_s26 = smov (%p35_p4, %s34_s26), 0  ;;  %s2202_s27 = smov (!%p35_p4, %s37_s27), %s1694_s11 }
  0x3a   : > { %2177 = sst [smem:[#allocation17_spill]] %s2200_s26  ;;  %s1284_s12 = sshll.u32 %s289_s13, 6 }
  0x3b   : > { %p39_p3 = scmp.ge.s32.totalorder %s2202_s27, 2  ;;  %s1902_s17 = scalar_lea.hbm %s2144_s0, %s1307_s14 }
  0x3c   : > { %s293_s23 = scalar_lea.vmem [#allocation5], %s1284_s12  ;;  %s1914_s26 = scalar_lea.sflag [#allocation6], %s289_s13 }
  0x3d   : > { %s300_s15 = sshll.u32 %s293_s23, 4  ;;  %s2204_s27 = smov (%p39_p3, %s2202_s27), 0  ;;  %s1906_s15 = int_to_ptr.vmem [resolvable:$true] %s300_s15 }
  0x3e   : > { %2178 = sst [smem:[#allocation18_spill]] %s2204_s27  ;;  %s41_s20 = ssub.s32 %s1694_s11, %s2204_s27 }
  0x3f   : > { %p1910_p7 = scmp.eq.s32.totalorder %s41_s20, 0  ;;  %s1566_s14 = scalar_lea.hbm %s1902_s17, 1024 }
  0x40   : > { %p1567_p8 = scmp.ne.s32.totalorder %s1902_s17, %s1566_s14  ;;  %p2180_p9 = scmp.ne.s32.totalorder %s2174_s24, 0 }
  0x41   : > { %s1571_s22 = scalar_lea.hbm %s2144_s0, 2048  ;;  %p1572_p5 = scmp.lt.u32.totalorder %s1902_s17, %s2144_s0 }
  0x42   : > { %p1568_p12 = pneg %p2180_p9  ;;  %p1573_p6 = scmp.lt.u32.totalorder %s1571_s22, %s1566_s14 }
  0x43   : > { %p1575_p11 = scmp.lt.u32.totalorder %s1566_s14, %s1902_s17 }
  0x44   : > { %p1569_p1 = pnand %p1568_p12, %p1567_p8  ;;  %p1574_p10 = por %p1573_p6, %p1572_p5 }
  0x46   : > { %p1570_p2 = pneg %p1569_p1  ;;  %p1576_p13 = por %p1575_p11, %p1574_p10 }
  0x48   : > { %p1577_p0 = pnand %p1576_p13, %p1570_p2 }
  0x4a   : > { %1580 = shalt.err (!%p1577_p0)
}
  0x4b   : > { %s1581_s13 = scalar_lea.vmem %s1906_s15, 1024  ;;  %s1701_s20 = smov [#allocation5]  }
  0x4c   : > { %p1582_p4 = scmp.ne.s32.totalorder %s1906_s15, %s1581_s13  ;;  %s1586_s12 = sshll.u32 %s1701_s20, 4  ;;  %s1587_s12 = int_to_ptr.vmem [resolvable:$false] %s1586_s12 }
  0x4d   : > { %s1588_s27 = scalar_lea.vmem %s1587_s12, 2048  ;;  %p1589_p1 = scmp.lt.s32.totalorder %s1906_s15, %s1587_s12 }
  0x4e   : > { %p1584_p3 = pnand %p1582_p4, %p1568_p12  ;;  %p1590_p5 = scmp.lt.s32.totalorder %s1588_s27, %s1581_s13 }
  0x50   : > { %p1585_p8 = pneg %p1584_p3  ;;  %p1591_p6 = por %p1590_p5, %p1589_p1 }
  0x52   : > { %p1592_p10 = pnand %p1591_p6, %p1585_p8 }
  0x54   : > { %1595 = shalt.err (!%p1592_p10)
}
  0x55   : > { %s1702_s14 = smov 128   ;;  %s1703_s25 = smov 8  }
  0x56   : > { %1420 = dma.hbm_to_vmem [thread:$0]  (!%p2180_p9), %s1902_s17, 1024, %s1906_s15, %s1914_s26, %s1702_s14, %s1702_s14, %s1703_s25  }
  0x57   : > { %s2181_s22 = sadd.s32 1, %s1678_s29  ;;  %p2182_p12 = scmp.ne.s32.totalorder %s2173_s21, 0 }
  0x58   : > { %s1947_s23 = scalar_select %p1910_p7, %s1678_s29, %s2181_s22  }
  0x59   : > { %333 = sbr.rel (%p2182_p12) target bundleno = 2077 (0x81d), region = 52  ;;  %s1952_s13 = sand.u32 (!%p2182_p12), 1, %s1674_s28  }
  0x5a   : > { %s1288_s20 = sshll.u32 (!%p2182_p12), %s1952_s13, 6  ;;  %s336_s12 = scalar_lea.sflag (!%p2182_p12), [#allocation6], %s1952_s13 }
  0x5b   : > { %s1956_s27 = scalar_lea.vmem (!%p2182_p12), [#allocation5], %s1288_s20  ;;  %p2183_p2 = scmp.ne.s32.totalorder (!%p2182_p12), %s2169_s18, 0 }
  0x60   : > { %1657 = dma.done.wait (%p2183_p2), %s336_s12, 1024  }
  0x61   : > { %1659 = vsyncadd (%p2183_p2), %s336_s12, 4294966272  ;;  %p2184_p7 = scmp.ne.s32.totalorder %s2167_s16, 0 }
  0x63   : > { %1661 = dma.done.wait (%p2184_p7), [#allocation9], 128  }
  0x64   : > { %1663 = vsyncadd (%p2184_p7), [#allocation9], 4294967168  ;;  %s1290_s1 = sshll.u32 %s1952_s13, 3  ;;  %p388_p9 = scmp.lt.s32.totalorder %s1682_s30, 2 }
  0x65   : > { %s1983_s12 = scalar_lea.vmem [#allocation10], %s1290_s1  ;;  %p1294_p11 = scmp.ne.s32.totalorder %s1682_s30, 0 }
  0x66   : > { %s389_s21 = scalar_select %p388_p9, %s1682_s30, 2 }
  0x67   : > { %403 = sbr.rel (%p1294_p11) target bundleno = 994 (0x3e2), region = 64  ;;  %v404_v0 = vld [vmem:[%s1956_s27] sm:$0xff] (!%p1294_p11)  ;;  %v405_v1 = vld [vmem:[%s1956_s27 + $0x8] sm:$0xff] (!%p1294_p11)  ;;  %v406_v2 = vld [vmem:[%s1956_s27 + $0x10] sm:$0xff] (!%p1294_p11)  ;;  %v1704_v3 = vmov (!%p1294_p11), 0.0|0.0   ;;  %vm1705_vm2 = vmmov (!%p1294_p11), 0  }
  0x68   : > { %s1969_s24 = sshll.u32 %s389_s21, 3  ;;  %1381 = vmatprep.subr.bf16.mxu0 (!%p1294_p11), %v1704_v3  ;;  %vm412_vm0 = vcmp.ge.f32.partialorder (!%p1294_p11), %v404_v0, 0.0  ;;  %vm413_vm1 = vcmp.ge.f32.partialorder (!%p1294_p11), %v405_v1, 0.0  ;;  %v420_v4 = vmul.f32 (!%p1294_p11), 0.2, %v404_v0  ;;  %v1706_v6 = vmov (!%p1294_p11), 0.0  }
  0x69   : > { %s391_s18 = scalar_lea.vmem %s2147_s3, %s1969_s24  ;;  %s395_s16 = scalar_lea.vmem %s2148_s4, %s1969_s24  ;;  %v421_v5 = vmul.f32 (!%p1294_p11), 0.2, %v405_v1  ;;  %1347 = vmatprep.mubr.msk.f32.mxu0 (!%p1294_p11), %vm1705_vm2, %v1706_v6  ;;  %532 = vst [vmem:[#allocation2] sm:$0xff] (!%p1294_p11), %v1706_v6  ;;  %v407_v7 = vld [vmem:[%s1956_s27 + $0x18] sm:$0xff] (!%p1294_p11)  ;;  %vm414_vm3 = vcmp.ge.f32.partialorder (!%p1294_p11), %v406_v2, 0.0  ;;  %v408_v9 = vld [vmem:[%s1956_s27 + $0x20] sm:$0xff] (!%p1294_p11)  ;;  %1350 = vmatprep.subr.mxu1 (!%p1294_p11), %v1706_v6 }
  0x6a   : > { %s399_s20 = scalar_lea.vmem %s2149_s5, %s1969_s24  ;;  %v422_v8 = vmul.f32 (!%p1294_p11), 0.2, %v406_v2  ;;  %v409_v10 = vld [vmem:[%s1956_s27 + $0x28] sm:$0xff] (!%p1294_p11)  ;;  %1352 = vmatprep.mubr.msk.f32.mxu1 (!%p1294_p11), %vm1705_vm2, %v1706_v6  ;;  %v428_v11 = vsel (!%p1294_p11), %vm412_vm0, %v404_v0, %v420_v4  ;;  %vm415_vm4 = vcmp.ge.f32.partialorder (!%p1294_p11), %v407_v7, 0.0  ;;  %v423_v13 = vmul.f32 (!%p1294_p11), 0.2, %v407_v7 }
  0x6b   : > { %v429_v12 = vsel (!%p1294_p11), %vm413_vm1, %v405_v1, %v421_v5  ;;  %v410_v14 = vld [vmem:[%s1956_s27 + $0x30] sm:$0xff] (!%p1294_p11)  ;;  %vm416_vm5 = vcmp.ge.f32.partialorder (!%p1294_p11), %v408_v9, 0.0  ;;  %vm417_vm6 = vcmp.ge.f32.partialorder (!%p1294_p11), %v409_v10, 0.0  ;;  %v411_v17 = vld [vmem:[%s1956_s27 + $0x38] sm:$0xff] (!%p1294_p11)  ;;  %v424_v19 = vmul.f32 (!%p1294_p11), 0.2, %v408_v9 }
  0x6c   : > { %v1382_v15 = vpack.c.bf16 (!%p1294_p11), %v429_v12, %v428_v11  ;;  %v430_v16 = vsel (!%p1294_p11), %vm414_vm3, %v406_v2, %v422_v8  ;;  %v431_v18 = vsel (!%p1294_p11), %vm415_vm4, %v407_v7, %v423_v13  ;;  %v425_v20 = vmul.f32 (!%p1294_p11), 0.2, %v409_v10  ;;  %v437_v26 = vld [vmem:[%s2146_s2] sm:$0xff] (!%p1294_p11)  ;;  %s1708_s14 = smov (!%p1294_p11), 63  }
  0x6d   : > { %v1385_v21 = vpack.c.bf16 (!%p1294_p11), %v431_v18, %v430_v16  ;;  %v426_v22 = vmul.f32 (!%p1294_p11), 0.2, %v410_v14  ;;  %v432_v23 = vsel (!%p1294_p11), %vm416_vm5, %v408_v9, %v424_v19  ;;  %v427_v25 = vmul.f32 (!%p1294_p11), 0.2, %v411_v17  ;;  %v436_v32 = vld [vmem:[#allocation8] sm:$0xff] (!%p1294_p11) }
  0x6e   : > { %1383 = vmatpush3.bf16.msra.mxu0 %v1382_v15  ;;  %v433_v24 = vsel %vm417_vm6, %v409_v10, %v425_v20  ;;  %vm533_vm7 = vcmask 506880   ;;  %vm418_vm8 = vcmp.ge.f32.partialorder %v410_v14, 0.0  ;;  %vm419_vm9 = vcmp.ge.f32.partialorder %v411_v17, 0.0  ;;  %v545_v51 = vld [vmem:[%s2151_s7] sm:$0xff] }
  0x6f   : > { %1384 = vmatprep.subr.bf16.mxu0 %v1704_v3  ;;  %534 = vst.msk [vmem:[#allocation2 + $0x8] sm:$0xff] %vm533_vm7, %v1706_v6  ;;  %v1707_v27 = vmov 0   ;;  %v1388_v28 = vpack.c.bf16 %v433_v24, %v432_v23  ;;  %v434_v29 = vsel %vm418_vm8, %v410_v14, %v426_v22  ;;  %v435_v30 = vsel %vm419_vm9, %v411_v17, %v427_v25  ;;  %v552_v54 = vld [vmem:[%s2150_s6] sm:$0xff] }
  0x70   : > { %1531 = vset.pattern.permute.xlu0 %v1707_v27  ;;  %1532 = vset.pattern.permute.xlu1 %v1707_v27  ;;  %v1391_v31 = vpack.c.bf16 %v435_v30, %v434_v29  ;;  %vm443_vm10 = vcmask 523264   ;;  %vm553_vm11 = vcmask 64512   ;;  %vm539_vm12 = vcmask 1039864  }
  0x71   : > { %440 = vperm.xlu0 %1531, %v437_v26  }
  0x72   : > { %1386 = vmatpush3.bf16.msra.mxu0 %v1385_v21 }
  0x73   : > { %1387 = vmatprep.subr.bf16.mxu0 %v1704_v3 }
  0x76   : > { %1389 = vmatpush3.bf16.msra.mxu0 %v1388_v28 }
  0x77   : > { %1390 = vmatprep.subr.bf16.mxu0 %v1704_v3 }
  0x7a   : > { %1392 = vmatpush3.bf16.msra.mxu0 %v1391_v31 }
  0x7d   : > { %1348 = vmatmul.mubr.msk.f32.vlgmr.msra.gmra.mrb[0].mxu0 %vm443_vm10, %v436_v32 }
  0xf0   : > { %v441_v33 = vpop.permute.xlu0 %440 }
 0x150   : > { %v513_v34 = vpop.f32.mrb[0].mxu0 }
 0x151   : > { %v514_v35 = vadd.f32 %v513_v34, %v441_v33  ;;  %v1349_v36 = vpop.f32.mrb[1].mxu0 }
 0x153   : > { %v517_v37 = vsel %vm443_vm10, %v514_v35, 0.0  ;;  %v521_v38 = vmul.f32 %v514_v35, %v514_v35 }
 0x154   : > { %518 = vadd.xlane.f32.xlu0 %v517_v37 }
 0x155   : > { %v522_v39 = vsel %vm443_vm10, %v521_v38, 0.0 }
 0x156   : > { %523 = vadd.xlane.f32.xlu1 %v522_v39 }
 0x1e1   : > { %v519_v40 = vpop.xlane.xlu0 %518 }
 0x1e2   : > { %v520_v41 = vmul.f32 0.015625, %v519_v40 }
 0x1e3   : > { %v524_v42 = vpop.xlane.xlu1 %523 }
 0x1e4   : > { %v527_v43 = vmul.f32 %v520_v41, %v520_v41  ;;  %v525_v44 = vmul.f32 0.015625, %v524_v42  ;;  %v526_v47 = vsub.f32 %v514_v35, %v520_v41 }
 0x1e6   : > { %v528_v45 = vsub.f32 %v525_v44, %v527_v43 }
 0x1e8   : > { %v529_v46 = vadd.f32 1e-05, %v528_v45 }
 0x1ea   : > { %1533 = vrsqrt.f32 %v529_v46 }
 0x1f4   : > { %v1534_v48 = vpop.eup %1533 }
 0x1f5   : > { %v531_v49 = vmul.f32 %v1534_v48, %v526_v47 }
 0x1f7   : > { %v541_v50 = vsel %vm443_vm10, %v531_v49, 0.0 }
 0x1f8   : > { %542 = vadd.xlane.f32.xlu1 %v541_v50 }
 0x209   : > { %548 = vperm.xlu1 %1532, %v545_v51  }
 0x285   : > { %v543_v52 = vpop.xlane.xlu1 %542 }
 0x286   : > { %v544_v53 = vmul.f32 0.015625, %v543_v52 }
 0x288   : > { %1351 = vmatpush3.msra.mxu1 %v544_v53 }
 0x289   : > { %1353 = vmatmul.mubr.msk.f32.vlgmr.msra.gmra.mrb[0].mxu1 %vm553_vm11, %v552_v54  ;;  %v549_v57 = vpop.permute.xlu1 %548 }
 0x28a   : > { %v551_v58 = vadd.f32 %v549_v57, %v531_v49 }
 0x35c   : > { %v623_v55 = vpop.f32.mrb[0].mxu1 }
 0x35d   : > { %629 = vperm.xlu1 %1532, %v623_v55   ;;  %v1354_v56 = vpop.f32.mrb[1].mxu1 }
 0x361   : > { %536 = vrot.lane.b32.xlu1 %v531_v49, %s1708_s14 }
 0x3dc   : > { %v630_v59 = vpop.permute.xlu1 %629 }
 0x3dd   : > { %v632_v60 = vadd.f32 %v630_v59, %v551_v58 }
 0x3df   : > { %633 = vst.msk [vmem:[#allocation4] sm:$0xff] %vm443_vm10, %v632_v60 }
 0x3e0   : > { %v537_v61 = vpop.permute.xlu1 %536 }
 0x3e1   : > { %540 = vst.msk [vmem:[#allocation2] sm:$0xff] %vm539_vm12, %v537_v61 }
 0x3e2 PF: > { %v634_v62 = vlaneseq  ;;  %650 = sbr.rel (%p1294_p11) target bundleno = 1141 (0x475), region = 68  ;;  %s1709_s25 = smov (!%p1294_p11), 44   ;;  %v711_v2 = vld [vmem:[#allocation2 + $0x8] sm:$0xff] (!%p1294_p11)  ;;  %vm718_vm13 = vcmask (!%p1294_p11), 359424   ;;  %vm705_vm14 = vcmask (!%p1294_p11), 506880   ;;  %vm663_vm1 = vcmask (!%p1294_p11), 523264  }
 0x3e3   : > { %s1710_s22 = smov (!%p1294_p11), 62   ;;  %s1711_s1 = smov (!%p1294_p11), 38   ;;  %vm743_vm2 = vcmask (!%p1294_p11), 310272   ;;  %vm731_vm3 = vcmask (!%p1294_p11), 334848  }
 0x3e4   : > { %v635_v63 = vand.u32 127, %v634_v62  ;;  %s1712_s21 = smov (!%p1294_p11), 92   ;;  %s1713_s27 = smov (!%p1294_p11), 86  }
 0x3e5   : > { %s1714_s26 = smov (!%p1294_p11), 68   ;;  %s1715_s17 = smov (!%p1294_p11), 41  }
 0x3e6   : > { %v2010_v0 = vand.u32 7, %v635_v63  ;;  %s1716_s15 = smov (!%p1294_p11), 89   ;;  %s1717_s14 = smov (!%p1294_p11), 65  }
 0x3e8   : > { %v710_v1 = vld [vmem:[#allocation2] sm:$0xff] (!%p1294_p11)  ;;  %v652_v3 = vadd.s32 (!%p1294_p11), 4294967293, %v2010_v0  ;;  %v672_v4 = vadd.s32 (!%p1294_p11), 3, %v2010_v0 }
 0x3e9   : > { %714 = vrot.lane.b32.xlu1 %v710_v1, %s1709_s25  ;;  %701 = vrot.lane.b32.xlu0 %v710_v1, %s1710_s22 }
 0x3ea   : > { %vm653_vm15 = vcmp.ge.s32.totalorder %v652_v3, 0  ;;  %vm674_vm0 = vcmp.lt.s32.totalorder %v672_v4, 8 }
 0x3ed   : > { %716 = vrot.lane.b32.xlu1 %v711_v2, %s1709_s25  ;;  %703 = vrot.lane.b32.xlu0 %v711_v2, %s1710_s22 }
 0x3f1   : > { %741 = vrot.lane.b32.xlu1 %v711_v2, %s1711_s1  ;;  %739 = vrot.lane.b32.xlu0 %v710_v1, %s1711_s1 }
 0x3f5   : > { %659 = vrot.lane.b32.xlu0 %v710_v1, %s1712_s21  ;;  %679 = vrot.lane.b32.xlu1 %v710_v1, %s1713_s27 }
 0x3f9   : > { %686 = vrot.lane.b32.xlu0 %v710_v1, %s1714_s26  ;;  %727 = vrot.lane.b32.xlu1 %v710_v1, %s1715_s17 }
 0x3fd   : > { %729 = vrot.lane.b32.xlu0 %v711_v2, %s1715_s17  ;;  %667 = vrot.lane.b32.xlu1 %v710_v1, %s1716_s15 }
 0x401   : > { %693 = vrot.lane.b32.xlu0 %v710_v1, %s1717_s14 }
 0x45b   : > { %v715_v5 = vpop.permute.xlu1 %714  ;;  %v702_v6 = vpop.permute.xlu0 %701 }
 0x45f   : > { %v717_v7 = vpop.permute.xlu1 %716  ;;  %v704_v8 = vpop.permute.xlu0 %703 }
 0x460   : > { %v719_v9 = vsel %vm718_vm13, %v715_v5, %v717_v7  ;;  %v706_v10 = vsel %vm705_vm14, %v702_v6, %v704_v8 }
 0x461   : > { %v721_v11 = vsel %vm653_vm15, %v719_v9, 0.0  ;;  %v708_v12 = vsel %vm674_vm0, %v706_v10, 0.0 }
 0x462   : > { %722 = vst.msk [vmem:[#allocation3 + $0x30] sm:$0xff] %vm663_vm1, %v721_v11  ;;  %709 = vst.msk [vmem:[#allocation3 + $0x28] sm:$0xff] %vm663_vm1, %v708_v12 }
 0x463   : > { %v742_v13 = vpop.permute.xlu1 %741  ;;  %v740_v14 = vpop.permute.xlu0 %739 }
 0x464   : > { %v744_v15 = vsel %vm743_vm2, %v740_v14, %v742_v13 }
 0x465   : > { %v746_v16 = vsel %vm674_vm0, %v744_v15, 0.0 }
 0x466   : > { %747 = vst.msk [vmem:[#allocation3 + $0x40] sm:$0xff] %vm663_vm1, %v746_v16 }
 0x467   : > { %v660_v17 = vpop.permute.xlu0 %659  ;;  %v680_v18 = vpop.permute.xlu1 %679 }
 0x468   : > { %v662_v19 = vsel %vm653_vm15, %v660_v17, 0.0  ;;  %v682_v20 = vsel %vm674_vm0, %v680_v18, 0.0 }
 0x469   : > { %664 = vst.msk [vmem:[#allocation3] sm:$0xff] %vm663_vm1, %v662_v19  ;;  %683 = vst.msk [vmem:[#allocation3 + $0x10] sm:$0xff] %vm663_vm1, %v682_v20 }
 0x46b   : > { %v687_v21 = vpop.permute.xlu0 %686  ;;  %v728_v22 = vpop.permute.xlu1 %727 }
 0x46c   : > { %v689_v23 = vsel %vm653_vm15, %v687_v21, 0.0 }
 0x46d   : > { %690 = vst.msk [vmem:[#allocation3 + $0x18] sm:$0xff] %vm663_vm1, %v689_v23 }
 0x46f   : > { %v730_v24 = vpop.permute.xlu0 %729  ;;  %v668_v25 = vpop.permute.xlu1 %667 }
 0x470   : > { %v732_v26 = vsel %vm731_vm3, %v728_v22, %v730_v24  ;;  %670 = vst.msk [vmem:[#allocation3 + $0x8] sm:$0xff] %vm663_vm1, %v668_v25 }
 0x471   : > { %734 = vst.msk [vmem:[#allocation3 + $0x38] sm:$0xff] %vm663_vm1, %v732_v26 }
 0x473   : > { %v694_v27 = vpop.permute.xlu0 %693 }
 0x474   : > { %696 = vst.msk [vmem:[#allocation3 + $0x20] sm:$0xff] %vm663_vm1, %v694_v27 }
 0x475 PF: > { %p1298_p13 = scmp.ne.s32.totalorder %s1682_s30, 1 }
 0x476   : > { %v811_v28 = vld [vmem:[#allocation2] sm:$0xff] (!%p1298_p13)  ;;  %s1718_s25 = smov (!%p1298_p13), 30   ;;  %s1719_s22 = smov (!%p1298_p13), 60   ;;  %v812_v29 = vld [vmem:[#allocation2 + $0x8] sm:$0xff] (!%p1298_p13)  ;;  %v753_v30 = vadd.s32 (!%p1298_p13), 4294967291, %v2010_v0  ;;  %v773_v31 = vadd.s32 (!%p1298_p13), 5, %v2010_v0 }
 0x477   : > { %751 = sbr.rel (%p1298_p13) target bundleno = 1283 (0x503), region = 72  ;;  %815 = vrot.lane.b32.xlu1 (!%p1298_p13), %v811_v28, %s1718_s25  ;;  %802 = vrot.lane.b32.xlu0 (!%p1298_p13), %v811_v28, %s1719_s22  ;;  %s1720_s1 = smov (!%p1298_p13), 20   ;;  %vm819_vm4 = vcmask (!%p1298_p13), 244736   ;;  %vm806_vm5 = vcmask (!%p1298_p13), 490496   ;;  %vm764_vm8 = vcmask (!%p1298_p13), 523264   ;;  %vm844_vm9 = vcmask (!%p1298_p13), 162816  }
 0x478   : > { %s1721_s21 = smov (!%p1298_p13), 110   ;;  %s1722_s27 = smov (!%p1298_p13), 100   ;;  %vm754_vm6 = vcmp.ge.s32.totalorder (!%p1298_p13), %v753_v30, 0  ;;  %vm775_vm7 = vcmp.lt.s32.totalorder (!%p1298_p13), %v773_v31, 8  ;;  %vm832_vm10 = vcmask (!%p1298_p13), 203776  }
 0x479   : > { %s1723_s26 = smov (!%p1298_p13), 70   ;;  %s1724_s17 = smov (!%p1298_p13), 25  }
 0x47a   : > { %s1725_s15 = smov (!%p1298_p13), 105   ;;  %s1726_s14 = smov (!%p1298_p13), 65  }
 0x47b   : > { %817 = vrot.lane.b32.xlu1 (!%p1298_p13), %v812_v29, %s1718_s25  ;;  %804 = vrot.lane.b32.xlu0 (!%p1298_p13), %v812_v29, %s1719_s22 }
 0x47f   : > { %842 = vrot.lane.b32.xlu1 %v812_v29, %s1720_s1  ;;  %840 = vrot.lane.b32.xlu0 %v811_v28, %s1720_s1 }
 0x483   : > { %760 = vrot.lane.b32.xlu0 %v811_v28, %s1721_s21  ;;  %780 = vrot.lane.b32.xlu1 %v811_v28, %s1722_s27 }
 0x487   : > { %787 = vrot.lane.b32.xlu0 %v811_v28, %s1723_s26  ;;  %828 = vrot.lane.b32.xlu1 %v811_v28, %s1724_s17 }
 0x48b   : > { %830 = vrot.lane.b32.xlu0 %v812_v29, %s1724_s17  ;;  %768 = vrot.lane.b32.xlu1 %v811_v28, %s1725_s15 }
 0x48f   : > { %794 = vrot.lane.b32.xlu0 %v811_v28, %s1726_s14 }
 0x4e9   : > { %v816_v32 = vpop.permute.xlu1 %815  ;;  %v803_v33 = vpop.permute.xlu0 %802 }
 0x4ed   : > { %v818_v34 = vpop.permute.xlu1 %817  ;;  %v805_v35 = vpop.permute.xlu0 %804 }
 0x4ee   : > { %v820_v36 = vsel %vm819_vm4, %v816_v32, %v818_v34  ;;  %v807_v37 = vsel %vm806_vm5, %v803_v33, %v805_v35 }
 0x4ef   : > { %v822_v38 = vsel %vm754_vm6, %v820_v36, 0.0  ;;  %v809_v39 = vsel %vm775_vm7, %v807_v37, 0.0 }
 0x4f0   : > { %823 = vst.msk [vmem:[#allocation3 + $0x30] sm:$0xff] %vm764_vm8, %v822_v38  ;;  %810 = vst.msk [vmem:[#allocation3 + $0x28] sm:$0xff] %vm764_vm8, %v809_v39 }
 0x4f1   : > { %v843_v40 = vpop.permute.xlu1 %842  ;;  %v841_v41 = vpop.permute.xlu0 %840 }
 0x4f2   : > { %v845_v42 = vsel %vm844_vm9, %v841_v41, %v843_v40 }
 0x4f3   : > { %v847_v43 = vsel %vm775_vm7, %v845_v42, 0.0 }
 0x4f4   : > { %848 = vst.msk [vmem:[#allocation3 + $0x40] sm:$0xff] %vm764_vm8, %v847_v43 }
 0x4f5   : > { %v761_v44 = vpop.permute.xlu0 %760  ;;  %v781_v45 = vpop.permute.xlu1 %780 }
 0x4f6   : > { %v763_v46 = vsel %vm754_vm6, %v761_v44, 0.0  ;;  %v783_v47 = vsel %vm775_vm7, %v781_v45, 0.0 }
 0x4f7   : > { %765 = vst.msk [vmem:[#allocation3] sm:$0xff] %vm764_vm8, %v763_v46  ;;  %784 = vst.msk [vmem:[#allocation3 + $0x10] sm:$0xff] %vm764_vm8, %v783_v47 }
 0x4f9   : > { %v788_v48 = vpop.permute.xlu0 %787  ;;  %v829_v49 = vpop.permute.xlu1 %828 }
 0x4fa   : > { %v790_v50 = vsel %vm754_vm6, %v788_v48, 0.0 }
 0x4fb   : > { %791 = vst.msk [vmem:[#allocation3 + $0x18] sm:$0xff] %vm764_vm8, %v790_v50 }
 0x4fd   : > { %v831_v51 = vpop.permute.xlu0 %830  ;;  %v769_v52 = vpop.permute.xlu1 %768 }
 0x4fe   : > { %v833_v53 = vsel %vm832_vm10, %v829_v49, %v831_v51  ;;  %771 = vst.msk [vmem:[#allocation3 + $0x8] sm:$0xff] %vm764_vm8, %v769_v52 }
 0x4ff   : > { %835 = vst.msk [vmem:[#allocation3 + $0x38] sm:$0xff] %vm764_vm8, %v833_v53 }
 0x501   : > { %v795_v54 = vpop.permute.xlu0 %794 }
 0x502   : > { %797 = vst.msk [vmem:[#allocation3 + $0x20] sm:$0xff] %vm764_vm8, %v795_v54 }
 0x503 PF: > { %p1299_p0 = scmp.ne.s32.totalorder %s1682_s30, 2 }
 0x504   : > { %v908_v55 = vld [vmem:[#allocation2] sm:$0xff] (!%p1299_p0)  ;;  %v854_v56 = vadd.s32 (!%p1299_p0), 4294967289, %v2010_v0  ;;  %s1727_s25 = smov (!%p1299_p0), 16   ;;  %s1728_s22 = smov (!%p1299_p0), 58   ;;  %v909_v57 = vld [vmem:[#allocation2 + $0x8] sm:$0xff] (!%p1299_p0)  ;;  %vm861_vm12 = vcmask (!%p1299_p0), 523264  }
 0x505   : > { %852 = sbr.rel (%p1299_p0) target bundleno = 1421 (0x58d), region = 76  ;;  %912 = vrot.lane.b32.xlu1 (!%p1299_p0), %v908_v55, %s1727_s25  ;;  %899 = vrot.lane.b32.xlu0 (!%p1299_p0), %v908_v55, %s1728_s22  ;;  %s1729_s1 = smov (!%p1299_p0), 2   ;;  %v870_v59 = vadd.s32 (!%p1299_p0), 7, %v2010_v0  ;;  %vm916_vm13 = vcmask (!%p1299_p0), 130048   ;;  %vm903_vm14 = vcmask (!%p1299_p0), 474112   ;;  %vm941_vm0 = vcmask (!%p1299_p0), 15360  }
 0x506   : > { %vm855_vm11 = vcmp.ge.s32.totalorder (!%p1299_p0), %v854_v56, 0  ;;  %s1730_s21 = smov (!%p1299_p0), 72   ;;  %s1731_s27 = smov (!%p1299_p0), 114   ;;  %vm929_vm1 = vcmask (!%p1299_p0), 72704  }
 0x507   : > { %v860_v58 = vsel (!%p1299_p0), %vm855_vm11, %v908_v55, 0.0  ;;  %s1732_s26 = smov (!%p1299_p0), 9   ;;  %s1733_s17 = smov (!%p1299_p0), 65   ;;  %vm872_vm15 = vcmp.lt.s32.totalorder (!%p1299_p0), %v870_v59, 8 }
 0x508   : > { %862 = vst.msk [vmem:[#allocation3] sm:$0xff] (!%p1299_p0), %vm861_vm12, %v860_v58  ;;  %s1734_s15 = smov (!%p1299_p0), 121  }
 0x509   : > { %914 = vrot.lane.b32.xlu1 (!%p1299_p0), %v909_v57, %s1727_s25  ;;  %901 = vrot.lane.b32.xlu0 (!%p1299_p0), %v909_v57, %s1728_s22 }
 0x50d   : > { %939 = vrot.lane.b32.xlu1 %v909_v57, %s1729_s1  ;;  %937 = vrot.lane.b32.xlu0 %v908_v55, %s1729_s1 }
 0x511   : > { %884 = vrot.lane.b32.xlu1 %v908_v55, %s1730_s21  ;;  %877 = vrot.lane.b32.xlu0 %v908_v55, %s1731_s27 }
 0x515   : > { %927 = vrot.lane.b32.xlu1 %v909_v57, %s1732_s26  ;;  %925 = vrot.lane.b32.xlu0 %v908_v55, %s1732_s26 }
 0x519   : > { %891 = vrot.lane.b32.xlu1 %v908_v55, %s1733_s17  ;;  %865 = vrot.lane.b32.xlu0 %v908_v55, %s1734_s15 }
 0x577   : > { %v913_v60 = vpop.permute.xlu1 %912  ;;  %v900_v61 = vpop.permute.xlu0 %899 }
 0x57b   : > { %v915_v62 = vpop.permute.xlu1 %914  ;;  %v902_v63 = vpop.permute.xlu0 %901 }
 0x57c   : > { %v917_v1 = vsel %vm916_vm13, %v913_v60, %v915_v62  ;;  %v904_v2 = vsel %vm903_vm14, %v900_v61, %v902_v63 }
 0x57d   : > { %v919_v3 = vsel %vm855_vm11, %v917_v1, 0.0  ;;  %v906_v4 = vsel %vm872_vm15, %v904_v2, 0.0 }
 0x57e   : > { %920 = vst.msk [vmem:[#allocation3 + $0x30] sm:$0xff] %vm861_vm12, %v919_v3  ;;  %907 = vst.msk [vmem:[#allocation3 + $0x28] sm:$0xff] %vm861_vm12, %v906_v4 }
 0x57f   : > { %v940_v5 = vpop.permute.xlu1 %939  ;;  %v938_v0 = vpop.permute.xlu0 %937 }
 0x580   : > { %v942_v6 = vsel %vm941_vm0, %v938_v0, %v940_v5 }
 0x581   : > { %v944_v7 = vsel %vm872_vm15, %v942_v6, 0.0 }
 0x582   : > { %945 = vst.msk [vmem:[#allocation3 + $0x40] sm:$0xff] %vm861_vm12, %v944_v7 }
 0x583   : > { %v885_v8 = vpop.permute.xlu1 %884  ;;  %v878_v9 = vpop.permute.xlu0 %877 }
 0x584   : > { %v887_v10 = vsel %vm855_vm11, %v885_v8, 0.0  ;;  %v880_v11 = vsel %vm872_vm15, %v878_v9, 0.0 }
 0x585   : > { %888 = vst.msk [vmem:[#allocation3 + $0x18] sm:$0xff] %vm861_vm12, %v887_v10  ;;  %881 = vst.msk [vmem:[#allocation3 + $0x10] sm:$0xff] %vm861_vm12, %v880_v11 }
 0x587   : > { %v928_v12 = vpop.permute.xlu1 %927  ;;  %v926_v13 = vpop.permute.xlu0 %925 }
 0x588   : > { %v930_v14 = vsel %vm929_vm1, %v926_v13, %v928_v12 }
 0x589   : > { %932 = vst.msk [vmem:[#allocation3 + $0x38] sm:$0xff] %vm861_vm12, %v930_v14 }
 0x58b   : > { %v892_v15 = vpop.permute.xlu1 %891  ;;  %v866_v16 = vpop.permute.xlu0 %865 }
 0x58c   : > { %894 = vst.msk [vmem:[#allocation3 + $0x20] sm:$0xff] %vm861_vm12, %v892_v15  ;;  %868 = vst.msk [vmem:[#allocation3 + $0x8] sm:$0xff] %vm861_vm12, %v866_v16 }
 0x58d PF: > { %v949_v19 = vld [vmem:[#allocation3 + $0x10] sm:$0xff]  ;;  %v1735_v20 = vmov 0.0|0.0   ;;  %v950_v22 = vld [vmem:[#allocation3 + $0x18] sm:$0xff]  ;;  %vm1736_vm2 = vmmov 0   ;;  %v1737_v23 = vmov 0.0   ;;  %v1738_v24 = vmov 0  }
 0x58e   : > { %1393 = vmatprep.subr.bf16.mxu0 %v1735_v20  ;;  %1373 = vmatprep.mubr.msk.f32.mxu0 %vm1736_vm2, %v1737_v23  ;;  %v1397_v25 = vpack.c.bf16 %v950_v22, %v949_v19  ;;  %v956_v26 = vld [vmem:[%s395_s16] sm:$0xff]  ;;  %v952_v28 = vld [vmem:[#allocation3 + $0x28] sm:$0xff]  ;;  %v955_v33 = vld [vmem:[#allocation3 + $0x40] sm:$0xff]  ;;  %vm962_vm3 = vcmask 588800   ;;  %vm1039_vm5 = vcmask 523264   ;;  %vm1057_vm6 = vcmask 64512  }
 0x58f   : > { %1535 = vset.pattern.permute.xlu0 %v1738_v24  ;;  %1376 = vmatprep.subr.mxu1 %v1737_v23  ;;  %v953_v30 = vld [vmem:[#allocation3 + $0x30] sm:$0xff]  ;;  %v1055_v55 = vld [vmem:[#allocation4] sm:$0xff] }
 0x590   : > { %v947_v17 = vld [vmem:[#allocation3] sm:$0xff]  ;;  %1378 = vmatprep.mubr.msk.f32.mxu1 %vm1736_vm2, %v1737_v23  ;;  %959 = vperm.xlu0 %1535, %v956_v26   ;;  %v954_v31 = vld [vmem:[#allocation3 + $0x38] sm:$0xff]  ;;  %v946_v34 = vld [vmem:[%s391_s18] sm:$0xff] }
 0x591   : > { %v1403_v32 = vpack.c.bf16 %v954_v31, %v953_v30  ;;  %v1056_v54 = vld [vmem:[%s399_s20] sm:$0xff] }
 0x593   : > { %v948_v18 = vld [vmem:[#allocation3 + $0x8] sm:$0xff]  ;;  %v951_v27 = vld [vmem:[#allocation3 + $0x20] sm:$0xff] }
 0x594   : > { %v1394_v21 = vpack.c.bf16 %v948_v18, %v947_v17  ;;  %v1400_v29 = vpack.c.bf16 %v952_v28, %v951_v27 }
 0x596   : > { %1395 = vmatpush3.bf16.msra.mxu0 %v1394_v21 }
 0x597   : > { %1396 = vmatprep.subr.bf16.mxu0 %v1735_v20 }
 0x59a   : > { %1398 = vmatpush3.bf16.msra.mxu0 %v1397_v25 }
 0x59b   : > { %1399 = vmatprep.subr.bf16.mxu0 %v1735_v20 }
 0x59e   : > { %1401 = vmatpush3.bf16.msra.mxu0 %v1400_v29 }
 0x59f   : > { %1402 = vmatprep.subr.bf16.mxu0 %v1735_v20 }
 0x5a2   : > { %1404 = vmatpush3.bf16.msra.mxu0 %v1403_v32 }
 0x5a3   : > { %1371 = vmatprep.subr.mxu0 %v1737_v23 }
 0x5a6   : > { %1372 = vmatpush3.msra.mxu0 %v955_v33 }
 0x5a7   : > { %1374 = vmatmul.mubr.msk.f32.vlgmr.msra.gmra.mrb[0].mxu0 %vm962_vm3, %v946_v34 }
 0x60f   : > { %v960_v35 = vpop.permute.xlu0 %959 }
 0x67a   : > { %v1032_v36 = vpop.f32.mrb[0].mxu0 }
 0x67b   : > { %v1033_v37 = vadd.f32 %v1032_v36, %v960_v35  ;;  %v1375_v38 = vpop.f32.mrb[1].mxu0 }
 0x67d   : > { %v1037_v39 = vmul.f32 0.2, %v1033_v37  ;;  %vm1036_vm4 = vcmp.ge.f32.partialorder %v1033_v37, 0.0 }
 0x67f   : > { %v1038_v40 = vsel %vm1036_vm4, %v1033_v37, %v1037_v39 }
 0x680   : > { %v1040_v41 = vsel %vm1039_vm5, %v1038_v40, 0.0  ;;  %v1044_v42 = vmul.f32 %v1038_v40, %v1038_v40 }
 0x681   : > { %1041 = vadd.xlane.f32.xlu0 %v1040_v41 }
 0x682   : > { %v1045_v43 = vsel %vm1039_vm5, %v1044_v42, 0.0 }
 0x683   : > { %1046 = vadd.xlane.f32.xlu1 %v1045_v43 }
 0x70e   : > { %v1042_v44 = vpop.xlane.xlu0 %1041 }
 0x70f   : > { %v1043_v45 = vmul.f32 0.015625, %v1042_v44 }
 0x710   : > { %v1047_v46 = vpop.xlane.xlu1 %1046 }
 0x711   : > { %v1050_v47 = vmul.f32 %v1043_v45, %v1043_v45  ;;  %v1048_v48 = vmul.f32 0.015625, %v1047_v46  ;;  %v1049_v51 = vsub.f32 %v1038_v40, %v1043_v45 }
 0x713   : > { %v1051_v49 = vsub.f32 %v1048_v48, %v1050_v47 }
 0x715   : > { %v1052_v50 = vadd.f32 1e-05, %v1051_v49 }
 0x717   : > { %1536 = vrsqrt.f32 %v1052_v50 }
 0x721   : > { %v1537_v52 = vpop.eup %1536 }
 0x722   : > { %v1054_v53 = vmul.f32 %v1537_v52, %v1049_v51 }
 0x724   : > { %1377 = vmatpush3.msra.mxu1 %v1054_v53 }
 0x725   : > { %1379 = vmatmul.mubr.msk.f32.vlgmr.msra.gmra.mrb[0].mxu1 %vm1057_vm6, %v1056_v54 }
 0x7f5   : > { %1135 = sbr.rel (%p1299_p0) target bundleno = 2052 (0x804), region = 80 }
 0x7f8   : > { %v1127_v56 = vpop.f32.mrb[0].mxu1 }
 0x7f9   : > { %v1131_v57 = vadd.f32 %v1127_v56, %v1055_v55  ;;  %v1380_v58 = vpop.f32.mrb[1].mxu1 }
 0x7fb   : > { %1132 = vst.msk [vmem:[#allocation4] sm:$0xff] %vm1039_vm5, %v1131_v57 }
 0x802   : > { %v1136_v59 = vld [vmem:[#allocation4] sm:$0xff] }
 0x803   : > { %1137 = vst.msk [vmem:[%s1983_s12] sm:$0xff] %vm1039_vm5, %v1136_v59 }
 0x804 PF: > { %s1304_s24 = sshll.u32 %s1686_s9, 7  ;;  %s1152_s26 = sshll.u32 %s1983_s12, 4  ;;  %s1153_s26 = int_to_ptr.vmem [resolvable:$true] %s1152_s26 }
 0x805   : > { %s2095_s27 = scalar_lea.hbm %s2152_s8, %s1304_s24  ;;  %s1139_s17 = scalar_lea.sflag [#allocation7], %s1952_s13 }
 0x806   : > { %s1596_s30 = scalar_lea.vmem %s1153_s26, 128  ;;  %p2185_p3 = scmp.ne.s32.totalorder %s2170_s19, 0 }
 0x807   : > { %p1597_p4 = scmp.ne.s32.totalorder %s1153_s26, %s1596_s30  ;;  %s1739_s15 = smov [#allocation10]  }
 0x808   : > { %s1600_s14 = sshll.u32 %s1739_s15, 4  ;;  %s1601_s14 = int_to_ptr.vmem [resolvable:$false] %s1600_s14 }
 0x809   : > { %p1598_p8 = pnand %p1597_p4, %p2185_p3  ;;  %s1602_s25 = scalar_lea.vmem %s1601_s14, 256 }
 0x80a   : > { %p1603_p5 = scmp.lt.s32.totalorder %s1153_s26, %s1601_s14  ;;  %p1604_p6 = scmp.lt.s32.totalorder %s1602_s25, %s1596_s30 }
 0x80b   : > { %p1599_p1 = pneg %p1598_p8 }
 0x80c   : > { %p1605_p10 = por %p1604_p6, %p1603_p5 }
 0x80e   : > { %p1606_p12 = pnand %p1605_p10, %p1599_p1 }
 0x810   : > { %1609 = shalt.err (!%p1606_p12)
}
 0x811   : > { %s1610_s9 = scalar_lea.hbm %s2095_s27, 128  ;;  %s1614_s22 = scalar_lea.hbm %s2152_s8, 256 }
 0x812   : > { %p1611_p2 = scmp.ne.s32.totalorder %s2095_s27, %s1610_s9  ;;  %p1615_p11 = scmp.lt.u32.totalorder %s2095_s27, %s2152_s8 }
 0x813   : > { %p1616_p13 = scmp.lt.u32.totalorder %s1614_s22, %s1610_s9  ;;  %p1618_p4 = scmp.lt.u32.totalorder %s1610_s9, %s2095_s27 }
 0x814   : > { %p1612_p7 = pnand %p1611_p2, %p2185_p3 }
 0x815   : > { %p1617_p0 = por %p1616_p13, %p1615_p11 }
 0x816   : > { %p1613_p9 = pneg %p1612_p7 }
 0x817   : > { %p1619_p8 = por %p1618_p4, %p1617_p0 }
 0x819   : > { %p1620_p1 = pnand %p1619_p8, %p1613_p9 }
 0x81b   : > { %1623 = shalt.err (!%p1620_p1)
}
 0x81c   : > { %1411 = dma.vmem_to_hbm [thread:$0]  (%p2185_p3), %s1153_s26, 128, %s2095_s27, %s1139_s17  }
 0x81d PF: > { %s2186_s16 = sld [smem:[#allocation15_spill]]  ;;  %s2187_s24 = sld [smem:[#allocation14_spill]] }
 0x81e   : > { %s2188_s20 = sld [smem:[#allocation16_spill]] }
 0x823   : > { %p1428_p5 = scmp.ge.s32.totalorder %s2186_s16, 2  ;;  %s1164_s21 = sand.u32 1, %s2187_s24  }
 0x824   : > { %p2189_p6 = scmp.ne.s32.totalorder %s2188_s20, 0  ;;  %s1165_s30 = scalar_lea.sflag [#allocation7], %s1164_s21 }
 0x826   : > { %p1422_p10 = pnand %p1428_p5, %p2189_p6 }
 0x828   : > { %1665 = dma.done.wait (!%p1422_p10), %s1165_s30, 128  }
 0x829   : > { %1667 = vsyncadd (!%p1422_p10), %s1165_s30, 4294967168  ;;  %s25_s12 = sadd.s32 1, %s2186_s16   ;;  %s2190_s19 = sld [smem:[#allocation17_spill]] }
 0x82a   : > { %p22_p12 = scmp.ge.s32.totalorder %s25_s12, 8   ;;  %s2191_s26 = sld [smem:[#allocation18_spill]] }
 0x82b   : > { %s2192_s27 = smov %s1674_s28  ;;  %s2193_s28 = smov %s1678_s29 }
 0x82c   : > { %s2194_s29 = smov %s1947_s23  ;;  %s2195_s30 = smov %s1690_s10 }
 0x82d   : > { %s2196_s9 = smov %s1694_s11  ;;  %24 = sbr.rel (!%p22_p12) target bundleno = 10 (0xa), region = 130 }
 0x82f   : > { %s2197_s10 = smov %s2190_s19 }
 0x830   : > { %s2198_s11 = smov %s2191_s26 }
 0x834   :  { %1170 = vsyncpa [#allocation6], 1 }
 0x835   :  { %1172 = vsyncpa [#allocation6 + $0x1], 1 }
 0x836   :  { %1173 = vsyncpa [#allocation9], 1 }
 0x837   :  { %1174 = vsyncpa [#allocation7], 1 }
 0x838   :  { %1176 = vsyncpa [#allocation7 + $0x1], 1 }

</bundles_post_ra>
